<compile_context>
chip_gen: v7x
topology: tpu7x:2x2x1
jax: 0.10.0
libtpu: 0.0.40
codegen_flags: <defaults>
</compile_context>

<pallas_src>
import functools

import jax
import jax.numpy as jnp
from jax.experimental import pallas as pl
from jax.experimental.pallas import tpu as pltpu


# ----------------------------------------------------------------------------------
# helpers
# ----------------------------------------------------------------------------------
def _pick_row_tile(h):
    """Row tile (low-res rows per grid step). Larger tiles amortize grid-step overhead
    (v5e/v6e guidance); 8 keeps per-step VMEM tiny (safe on v7x's 64 MiB)."""
    for t in (32, 16, 8):
        if h % t == 0:
            return t
    return 8  # H is zero-padded up to a multiple of 8 in the wrapper


# ----------------------------------------------------------------------------------
# Pallas kernel: fused (2x nearest upsample) + per-sample 3x3 conv + bias(+BN) + ReLU
# ----------------------------------------------------------------------------------
def _up_sk_kernel(xa_ref, xh_ref, w_ref, b_ref, o_ref):
    # xa_ref : (1, RT, W+2, Cin)    body rows of the zero-padded LOW-RES sample (bf16)
    # xh_ref : (1, 2,  W+2, Cin)    2-row bottom halo for this tile (bf16)
    # w_ref  : (1, 9*Cin, 4*Cout)   phase-combined im2col weights, BN scale folded (bf16)
    #                               K order (r, s, c); N order (a, pb, o)
    # b_ref  : (1, 1, 4*Cout)       BN-folded bias, tiled over (a, pb) (f32)
    # o_ref  : (1, RT, 4*W*Cout)    output rows i of this tile, lanes ordered (a, j, pb, o)
    rt = xa_ref.shape[1]
    wp = xa_ref.shape[2]
    cin = xa_ref.shape[3]
    w_lo = wp - 2
    four_c = w_ref.shape[2]
    two_c = four_c // 2

    # contiguous (RT+2)-row padded window for this tile
    x_win = jnp.concatenate([xa_ref[0], xh_ref[0]], axis=0)          # (RT+2, W+2, Cin)

    # im2col over the 3x3 low-res stencil; taps packed into K (review item #8).
    patches = [x_win[r:r + rt, s:s + w_lo, :]
               for r in range(3) for s in range(3)]                   # 9 x (RT, W, Cin)
    lhs = jnp.concatenate(patches, axis=-1)                           # (RT, W, 9*Cin)
    lhs = lhs.reshape(rt * w_lo, 9 * cin)                             # free leading merge

    # single wide MXU dot per tile: bf16 operands, f32 accumulation
    y = jnp.dot(lhs, w_ref[0], preferred_element_type=jnp.float32)    # (RT*W, 4*Cout)
    y = jnp.maximum(y + b_ref[0], 0.0)                                # +bias, ReLU (f32)

    # (i, j | a, pb, o)  ->  (i | a, j, pb, o) slab, then ONE lane-dense aligned store.
    # The j->lane merge is spelled as an explicit lane concat (robust lowering); for
    # 2*Cout >= 128 a plain reshape would already be lane-dense.
    halves = []
    for a in range(2):
        ya = y[:, a * two_c:(a + 1) * two_c].reshape(rt, w_lo, two_c)  # free leading split
        halves.append(jnp.concatenate([ya[:, j, :] for j in range(w_lo)], axis=-1))
    slab = jnp.concatenate(halves, axis=-1)                            # (RT, 2*W*2*Cout)
    o_ref[0, :, :] = slab.astype(o_ref.dtype)                          # (8,512)-aligned vst


def _up_sk_pallas(x_pad, w_big, b_big, *, row_tile):
    """x_pad: (B, H_pad+2, W+2, Cin) bf16 zero-padded low-res NHWC;
    w_big: (B, 9*Cin, 4*Cout) bf16; b_big: (B, 1, 4*Cout) f32.
    Returns (B, H_pad, 2*W*2*Cout) f32 with lane order (a, j, pb, o)."""
    B, Hp2, Wp, Cin = x_pad.shape
    H_pad = Hp2 - 2
    W = Wp - 2
    four_c = w_big.shape[-1]
    cout = four_c // 4
    n_rt = H_pad // row_tile
    lane_w = 4 * W * cout

    return pl.pallas_call(
        _up_sk_kernel,
        out_shape=jax.ShapeDtypeStruct((B, H_pad, lane_w), jnp.float32),
        grid=(B, n_rt),
        in_specs=[
            # body rows of the tile (row-tiled: no full-sample VMEM residency -> v7x safe)
            pl.BlockSpec((1, row_tile, Wp, Cin), lambda b, r: (b, r, 0, 0)),
            # 2-row bottom halo of the tile (same array, second pass)
            pl.BlockSpec((1, 2, Wp, Cin),
                         lambda b, r: (b, (r + 1) * (row_tile // 2), 0, 0)),
            pl.BlockSpec((1, 9 * Cin, four_c), lambda b, r: (b, 0, 0)),
            pl.BlockSpec((1, 1, four_c), lambda b, r: (b, 0, 0)),
        ],
        out_specs=pl.BlockSpec((1, row_tile, lane_w), lambda b, r: (b, r, 0)),
        compiler_params=pltpu.CompilerParams(
            dimension_semantics=("parallel", "parallel"),
            # per-step footprint is KB-scale; 32 MiB cap is safe on v5e/v6e/v7x
            vmem_limit_bytes=32 * 1024 * 1024,
        ),
    )(x_pad, x_pad, w_big, b_big)


# ----------------------------------------------------------------------------------
# up_conv_sk forward (Upsample 2x -> selective-kernel conv -> BN -> ReLU)
# ----------------------------------------------------------------------------------
def up_conv_sk_forward_nhwc(x_nhwc, p, *, row_tile=None):
    """NHWC-native path (no transposes): x (B, H, W, Cin) -> (B, 2H, 2W, Cout)."""
    B, H, W, Cin = x_nhwc.shape
    K, Cout = p["weight"].shape[0], p["weight"].shape[1]

    # --- kernel-selection attention (tiny glue).  GAP(nearest_up(x)) == GAP(x). ---
    pooled = jnp.mean(x_nhwc, axis=(1, 2))                        # (B, Cin)
    h1 = jnp.maximum(pooled @ p["fc1_w"].T, 0.0)
    logits = h1 @ p["fc2_w"].T + p["fc2_b"]
    attn = jax.nn.softmax(logits / p["temperature"], axis=1)      # (B, K)

    # --- per-sample aggregated conv weights / bias ---
    w_agg = (attn @ p["weight"].reshape(K, -1)).reshape(B, Cout, Cin, 3, 3)
    b_agg = attn @ p["bias"]                                      # (B, Cout)

    # --- fold eval-mode BN into weights / bias ---
    scale = p["bn_gamma"] / jnp.sqrt(p["bn_var"] + 1e-5)
    shift = p["bn_beta"] - p["bn_mean"] * scale
    w_bn = w_agg * scale[None, :, None, None, None]               # (B, Cout, Cin, 3, 3)
    b_eff = b_agg * scale[None, :] + shift[None, :]               # (B, Cout)

    # --- fuse 2x nearest upsample into 4 "phase" 3x3 kernels on the LOW-RES grid ---
    # A[phase, r, k] = 1 iff original 3x3 tap k lands on low-res row/col offset r
    A = jnp.array([[[1., 0., 0.],
                    [0., 1., 1.],
                    [0., 0., 0.]],
                   [[0., 0., 0.],
                    [1., 1., 0.],
                    [0., 0., 1.]]], jnp.float32)                  # (2, 3, 3)
    w_big = jnp.einsum('arh,psw,bochw->brscapo', A, A, w_bn)      # (B,3,3,Cin,2,2,Cout)
    w_big = w_big.reshape(B, 9 * Cin, 4 * Cout).astype(jnp.bfloat16)
    b_big = jnp.tile(b_eff, (1, 4))[:, None, :]                   # (B, 1, 4*Cout) f32

    # --- tiling (pad H up to the row tile instead of degenerating to tile=1) ---
    if row_tile is None:
        row_tile = _pick_row_tile(H)
    assert row_tile % 8 == 0, "row_tile must be a multiple of 8"
    H_pad = row_tile * (-(-H // row_tile))

    # 1-px zero halo on the LOW-RES input (4x cheaper than padding at high-res), bf16.
    # TODO(synk): fold this pad into the kernel (zero-mask edge tiles) to drop the extra
    #             HBM pass entirely.
    x_pad = jnp.pad(x_nhwc.astype(jnp.bfloat16),
                    ((0, 0), (1, 1 + (H_pad - H)), (1, 1), (0, 0)))

    y_flat = _up_sk_pallas(x_pad, w_big, b_big, row_tile=row_tile)  # (B, H_pad, 4*W*Cout)
    if H_pad != H:
        y_flat = y_flat[:, :H, :]
    # lanes are (a, j, pb, o): (i,a)->2i+a and (j,pb)->2j+pb are free row-major merges
    return y_flat.reshape(B, 2 * H, 2 * W, Cout)


def up_conv_sk_forward(x_nchw, p, *, row_tile=None):
    """NCHW adapter mirroring the PyTorch module interface.  The surrounding model
    should call up_conv_sk_forward_nhwc directly to avoid these layout transposes."""
    x_nhwc = jnp.transpose(x_nchw, (0, 2, 3, 1))
    y_nhwc = up_conv_sk_forward_nhwc(x_nhwc, p, row_tile=row_tile)
    return jnp.transpose(y_nhwc, (0, 3, 1, 2))


# ----------------------------------------------------------------------------------
# pure-JAX reference (upsample -> lax.conv -> BN -> ReLU), NCHW, f32 HIGHEST
# ----------------------------------------------------------------------------------
def up_conv_sk_reference(x_nchw, p):
    B, Cin, H, W = x_nchw.shape
    K, Cout = p["weight"].shape[0], p["weight"].shape[1]
    x_up = jnp.repeat(jnp.repeat(x_nchw, 2, axis=2), 2, axis=3)   # nearest 2x

    pooled = jnp.mean(x_up, axis=(2, 3))
    h1 = jnp.maximum(pooled @ p["fc1_w"].T, 0.0)
    logits = h1 @ p["fc2_w"].T + p["fc2_b"]
    attn = jax.nn.softmax(logits / p["temperature"], axis=1)
    w_agg = (attn @ p["weight"].reshape(K, -1)).reshape(B, Cout, Cin, 3, 3)
    b_agg = attn @ p["bias"]

    def one_sample(xb, wb, bb):
        y = jax.lax.conv_general_dilated(
            xb[None], wb, window_strides=(1, 1), padding=((1, 1), (1, 1)),
            dimension_numbers=("NCHW", "OIHW", "NCHW"),
            precision=jax.lax.Precision.HIGHEST)
        return y[0] + bb[:, None, None]

    y = jax.vmap(one_sample)(x_up, w_agg, b_agg)                  # (B, Cout, 2H, 2W)
    scale = p["bn_gamma"] / jnp.sqrt(p["bn_var"] + 1e-5)
    shift = p["bn_beta"] - p["bn_mean"] * scale
    y = y * scale[None, :, None, None] + shift[None, :, None, None]
    return jnp.maximum(y, 0.0)


# ----------------------------------------------------------------------------------
def make_params(key, ch_in, ch_out, K=4, ratio=0.25, temperature=34.0):
    hidden = int(ch_in * ratio) + 1 if ch_in != 3 else K
    ks = jax.random.split(key, 9)
    return {
        "fc1_w": jax.random.normal(ks[0], (hidden, ch_in), jnp.float32) * 0.5,
        "fc2_w": jax.random.normal(ks[1], (K, hidden), jnp.float32) * 0.5,
        "fc2_b": jax.random.normal(ks[2], (K,), jnp.float32) * 0.1,
        "weight": jax.random.normal(ks[3], (K, ch_out, ch_in, 3, 3), jnp.float32) * 0.2,
        "bias": jax.random.normal(ks[4], (K, ch_out), jnp.float32) * 0.1,
        "bn_gamma": 0.5 + jax.random.uniform(ks[5], (ch_out,), jnp.float32),
        "bn_beta": jax.random.normal(ks[6], (ch_out,), jnp.float32) * 0.1,
        "bn_mean": jax.random.normal(ks[7], (ch_out,), jnp.float32) * 0.1,
        "bn_var": 0.5 + jax.random.uniform(ks[8], (ch_out,), jnp.float32),
        "temperature": jnp.float32(temperature),
    }


if __name__ == "__main__":
    B, CH_IN, CH_OUT, H, W = 2, 4, 8, 16, 16

    key = jax.random.PRNGKey(0)
    kx, kp = jax.random.split(key)
    x = jax.random.normal(kx, (B, CH_IN, H, W), jnp.float32)
    params = make_params(kp, CH_IN, CH_OUT)

    fwd = jax.jit(up_conv_sk_forward, static_argnames=("row_tile",))
    # row_tile=8 -> two row tiles per sample: exercises the halo / multi-tile path
    y = jax.block_until_ready(fwd(x, params, row_tile=8))

    y_ref = jax.block_until_ready(up_conv_sk_reference(x, params))
    assert y.shape == (B, CH_OUT, 2 * H, 2 * W), y.shape
    max_err = float(jnp.max(jnp.abs(y - y_ref)))
    # bf16 dot operands (f32 accumulation) vs f32 HIGHEST reference -> loosened tolerance
    assert jnp.allclose(y, y_ref, rtol=3e-2, atol=3e-2), max_err

    print("KERNEL_OK")
</pallas_src>

<mosaic_0001>
module attributes {stable_mosaic.version = 11 : i64} {
  func.func @_up_sk_kernel(%arg0: i32, %arg1: i32, %arg2: memref<1x8x18x4xbf16, #tpu.memory_space<vmem>>, %arg3: memref<1x2x18x4xbf16, #tpu.memory_space<vmem>>, %arg4: memref<1x36x32xbf16, #tpu.memory_space<vmem>>, %arg5: memref<1x1x32xf32, #tpu.memory_space<vmem>>, %arg6: memref<1x8x512xf32, #tpu.memory_space<vmem>>) attributes {dimension_semantics = [#tpu.dimension_semantics<parallel>, #tpu.dimension_semantics<parallel>], iteration_bounds = array<i64: 2, 2>, scalar_prefetch = 0 : i64, scratch_operands = 0 : i64, tpu.core_type = #tpu.core_type<tc>, window_params = [{transform_indices = @transform_0, window_bounds = array<i64: 1, 8, 18, 4>}, {transform_indices = @transform_1, window_bounds = array<i64: 1, 2, 18, 4>}, {transform_indices = @transform_2, window_bounds = array<i64: 1, 36, 32>}, {transform_indices = @transform_3, window_bounds = array<i64: 1, 1, 32>}, {transform_indices = @transform_4, window_bounds = array<i64: 1, 8, 512>}]} {
    %c0 = arith.constant 0 : index
    %c0_0 = arith.constant 0 : index
    %c0_1 = arith.constant 0 : index
    %c0_2 = arith.constant 0 : index
    %0 = vector.load %arg2[%c0, %c0_0, %c0_1, %c0_2] : memref<1x8x18x4xbf16, #tpu.memory_space<vmem>>, vector<1x8x18x4xbf16>
    %1 = vector.shape_cast %0 : vector<1x8x18x4xbf16> to vector<8x18x4xbf16>
    %c0_3 = arith.constant 0 : index
    %c0_4 = arith.constant 0 : index
    %c0_5 = arith.constant 0 : index
    %c0_6 = arith.constant 0 : index
    %2 = vector.load %arg3[%c0_3, %c0_4, %c0_5, %c0_6] : memref<1x2x18x4xbf16, #tpu.memory_space<vmem>>, vector<1x2x18x4xbf16>
    %3 = vector.shape_cast %2 : vector<1x2x18x4xbf16> to vector<2x18x4xbf16>
    %4 = tpu.concatenate %1, %3 in 0 : vector<8x18x4xbf16>, vector<2x18x4xbf16> -> vector<10x18x4xbf16>
    %5 = vector.extract_strided_slice %4 {offsets = [0, 0, 0], sizes = [8, 16, 4], strides = [1, 1, 1]} : vector<10x18x4xbf16> to vector<8x16x4xbf16>
    %6 = vector.extract_strided_slice %4 {offsets = [0, 1, 0], sizes = [8, 16, 4], strides = [1, 1, 1]} : vector<10x18x4xbf16> to vector<8x16x4xbf16>
    %7 = vector.extract_strided_slice %4 {offsets = [0, 2, 0], sizes = [8, 16, 4], strides = [1, 1, 1]} : vector<10x18x4xbf16> to vector<8x16x4xbf16>
    %8 = vector.extract_strided_slice %4 {offsets = [1, 0, 0], sizes = [8, 16, 4], strides = [1, 1, 1]} : vector<10x18x4xbf16> to vector<8x16x4xbf16>
    %9 = vector.extract_strided_slice %4 {offsets = [1, 1, 0], sizes = [8, 16, 4], strides = [1, 1, 1]} : vector<10x18x4xbf16> to vector<8x16x4xbf16>
    %10 = vector.extract_strided_slice %4 {offsets = [1, 2, 0], sizes = [8, 16, 4], strides = [1, 1, 1]} : vector<10x18x4xbf16> to vector<8x16x4xbf16>
    %11 = vector.extract_strided_slice %4 {offsets = [2, 0, 0], sizes = [8, 16, 4], strides = [1, 1, 1]} : vector<10x18x4xbf16> to vector<8x16x4xbf16>
    %12 = vector.extract_strided_slice %4 {offsets = [2, 1, 0], sizes = [8, 16, 4], strides = [1, 1, 1]} : vector<10x18x4xbf16> to vector<8x16x4xbf16>
    %13 = vector.extract_strided_slice %4 {offsets = [2, 2, 0], sizes = [8, 16, 4], strides = [1, 1, 1]} : vector<10x18x4xbf16> to vector<8x16x4xbf16>
    %14 = tpu.concatenate %5, %6, %7, %8, %9, %10, %11, %12, %13 in 2 : vector<8x16x4xbf16>, vector<8x16x4xbf16>, vector<8x16x4xbf16>, vector<8x16x4xbf16>, vector<8x16x4xbf16>, vector<8x16x4xbf16>, vector<8x16x4xbf16>, vector<8x16x4xbf16>, vector<8x16x4xbf16> -> vector<8x16x36xbf16>
    %15 = vector.shape_cast %14 : vector<8x16x36xbf16> to vector<128x36xbf16>
    %c0_7 = arith.constant 0 : index
    %c0_8 = arith.constant 0 : index
    %c0_9 = arith.constant 0 : index
    %16 = vector.load %arg4[%c0_7, %c0_8, %c0_9] : memref<1x36x32xbf16, #tpu.memory_space<vmem>>, vector<1x36x32xbf16>
    %17 = vector.shape_cast %16 : vector<1x36x32xbf16> to vector<36x32xbf16>
    %cst = arith.constant dense<0.000000e+00> : vector<128x32xf32>
    %18 = tpu.matmul %15, %17, %cst {dimension_numbers = #tpu.dot_dimension_numbers<[1], [0], [0], [1], [0, 0, 1, 1], [], []>} : vector<128x36xbf16>, vector<36x32xbf16>, vector<128x32xf32> -> vector<128x32xf32>
    %c0_10 = arith.constant 0 : index
    %c0_11 = arith.constant 0 : index
    %c0_12 = arith.constant 0 : index
    %19 = vector.load %arg5[%c0_10, %c0_11, %c0_12] : memref<1x1x32xf32, #tpu.memory_space<vmem>>, vector<1x1x32xf32>
    %20 = vector.shape_cast %19 : vector<1x1x32xf32> to vector<1x32xf32>
    %21 = vector.broadcast %20 : vector<1x32xf32> to vector<128x32xf32>
    %22 = arith.addf %18, %21 : vector<128x32xf32>
    %cst_13 = arith.constant 0.000000e+00 : f32
    %23 = vector.broadcast %cst_13 : f32 to vector<128x32xf32>
    %24 = arith.maximumf %22, %23 : vector<128x32xf32>
    %25 = vector.extract_strided_slice %24 {offsets = [0, 0], sizes = [128, 16], strides = [1, 1]} : vector<128x32xf32> to vector<128x16xf32>
    %26 = vector.shape_cast %25 : vector<128x16xf32> to vector<8x16x16xf32>
    %27 = vector.extract_strided_slice %26 {offsets = [0, 0, 0], sizes = [8, 1, 16], strides = [1, 1, 1]} : vector<8x16x16xf32> to vector<8x1x16xf32>
    %28 = vector.shape_cast %27 : vector<8x1x16xf32> to vector<8x16xf32>
    %29 = vector.extract_strided_slice %26 {offsets = [0, 1, 0], sizes = [8, 1, 16], strides = [1, 1, 1]} : vector<8x16x16xf32> to vector<8x1x16xf32>
    %30 = vector.shape_cast %29 : vector<8x1x16xf32> to vector<8x16xf32>
    %31 = vector.extract_strided_slice %26 {offsets = [0, 2, 0], sizes = [8, 1, 16], strides = [1, 1, 1]} : vector<8x16x16xf32> to vector<8x1x16xf32>
    %32 = vector.shape_cast %31 : vector<8x1x16xf32> to vector<8x16xf32>
    %33 = vector.extract_strided_slice %26 {offsets = [0, 3, 0], sizes = [8, 1, 16], strides = [1, 1, 1]} : vector<8x16x16xf32> to vector<8x1x16xf32>
    %34 = vector.shape_cast %33 : vector<8x1x16xf32> to vector<8x16xf32>
    %35 = vector.extract_strided_slice %26 {offsets = [0, 4, 0], sizes = [8, 1, 16], strides = [1, 1, 1]} : vector<8x16x16xf32> to vector<8x1x16xf32>
    %36 = vector.shape_cast %35 : vector<8x1x16xf32> to vector<8x16xf32>
    %37 = vector.extract_strided_slice %26 {offsets = [0, 5, 0], sizes = [8, 1, 16], strides = [1, 1, 1]} : vector<8x16x16xf32> to vector<8x1x16xf32>
    %38 = vector.shape_cast %37 : vector<8x1x16xf32> to vector<8x16xf32>
    %39 = vector.extract_strided_slice %26 {offsets = [0, 6, 0], sizes = [8, 1, 16], strides = [1, 1, 1]} : vector<8x16x16xf32> to vector<8x1x16xf32>
    %40 = vector.shape_cast %39 : vector<8x1x16xf32> to vector<8x16xf32>
    %41 = vector.extract_strided_slice %26 {offsets = [0, 7, 0], sizes = [8, 1, 16], strides = [1, 1, 1]} : vector<8x16x16xf32> to vector<8x1x16xf32>
    %42 = vector.shape_cast %41 : vector<8x1x16xf32> to vector<8x16xf32>
    %43 = vector.extract_strided_slice %26 {offsets = [0, 8, 0], sizes = [8, 1, 16], strides = [1, 1, 1]} : vector<8x16x16xf32> to vector<8x1x16xf32>
    %44 = vector.shape_cast %43 : vector<8x1x16xf32> to vector<8x16xf32>
    %45 = vector.extract_strided_slice %26 {offsets = [0, 9, 0], sizes = [8, 1, 16], strides = [1, 1, 1]} : vector<8x16x16xf32> to vector<8x1x16xf32>
    %46 = vector.shape_cast %45 : vector<8x1x16xf32> to vector<8x16xf32>
    %47 = vector.extract_strided_slice %26 {offsets = [0, 10, 0], sizes = [8, 1, 16], strides = [1, 1, 1]} : vector<8x16x16xf32> to vector<8x1x16xf32>
    %48 = vector.shape_cast %47 : vector<8x1x16xf32> to vector<8x16xf32>
    %49 = vector.extract_strided_slice %26 {offsets = [0, 11, 0], sizes = [8, 1, 16], strides = [1, 1, 1]} : vector<8x16x16xf32> to vector<8x1x16xf32>
    %50 = vector.shape_cast %49 : vector<8x1x16xf32> to vector<8x16xf32>
    %51 = vector.extract_strided_slice %26 {offsets = [0, 12, 0], sizes = [8, 1, 16], strides = [1, 1, 1]} : vector<8x16x16xf32> to vector<8x1x16xf32>
    %52 = vector.shape_cast %51 : vector<8x1x16xf32> to vector<8x16xf32>
    %53 = vector.extract_strided_slice %26 {offsets = [0, 13, 0], sizes = [8, 1, 16], strides = [1, 1, 1]} : vector<8x16x16xf32> to vector<8x1x16xf32>
    %54 = vector.shape_cast %53 : vector<8x1x16xf32> to vector<8x16xf32>
    %55 = vector.extract_strided_slice %26 {offsets = [0, 14, 0], sizes = [8, 1, 16], strides = [1, 1, 1]} : vector<8x16x16xf32> to vector<8x1x16xf32>
    %56 = vector.shape_cast %55 : vector<8x1x16xf32> to vector<8x16xf32>
    %57 = vector.extract_strided_slice %26 {offsets = [0, 15, 0], sizes = [8, 1, 16], strides = [1, 1, 1]} : vector<8x16x16xf32> to vector<8x1x16xf32>
    %58 = vector.shape_cast %57 : vector<8x1x16xf32> to vector<8x16xf32>
    %59 = tpu.concatenate %28, %30, %32, %34, %36, %38, %40, %42, %44, %46, %48, %50, %52, %54, %56, %58 in 1 : vector<8x16xf32>, vector<8x16xf32>, vector<8x16xf32>, vector<8x16xf32>, vector<8x16xf32>, vector<8x16xf32>, vector<8x16xf32>, vector<8x16xf32>, vector<8x16xf32>, vector<8x16xf32>, vector<8x16xf32>, vector<8x16xf32>, vector<8x16xf32>, vector<8x16xf32>, vector<8x16xf32>, vector<8x16xf32> -> vector<8x256xf32>
    %60 = vector.extract_strided_slice %24 {offsets = [0, 16], sizes = [128, 16], strides = [1, 1]} : vector<128x32xf32> to vector<128x16xf32>
    %61 = vector.shape_cast %60 : vector<128x16xf32> to vector<8x16x16xf32>
    %62 = vector.extract_strided_slice %61 {offsets = [0, 0, 0], sizes = [8, 1, 16], strides = [1, 1, 1]} : vector<8x16x16xf32> to vector<8x1x16xf32>
    %63 = vector.shape_cast %62 : vector<8x1x16xf32> to vector<8x16xf32>
    %64 = vector.extract_strided_slice %61 {offsets = [0, 1, 0], sizes = [8, 1, 16], strides = [1, 1, 1]} : vector<8x16x16xf32> to vector<8x1x16xf32>
    %65 = vector.shape_cast %64 : vector<8x1x16xf32> to vector<8x16xf32>
    %66 = vector.extract_strided_slice %61 {offsets = [0, 2, 0], sizes = [8, 1, 16], strides = [1, 1, 1]} : vector<8x16x16xf32> to vector<8x1x16xf32>
    %67 = vector.shape_cast %66 : vector<8x1x16xf32> to vector<8x16xf32>
    %68 = vector.extract_strided_slice %61 {offsets = [0, 3, 0], sizes = [8, 1, 16], strides = [1, 1, 1]} : vector<8x16x16xf32> to vector<8x1x16xf32>
    %69 = vector.shape_cast %68 : vector<8x1x16xf32> to vector<8x16xf32>
    %70 = vector.extract_strided_slice %61 {offsets = [0, 4, 0], sizes = [8, 1, 16], strides = [1, 1, 1]} : vector<8x16x16xf32> to vector<8x1x16xf32>
    %71 = vector.shape_cast %70 : vector<8x1x16xf32> to vector<8x16xf32>
    %72 = vector.extract_strided_slice %61 {offsets = [0, 5, 0], sizes = [8, 1, 16], strides = [1, 1, 1]} : vector<8x16x16xf32> to vector<8x1x16xf32>
    %73 = vector.shape_cast %72 : vector<8x1x16xf32> to vector<8x16xf32>
    %74 = vector.extract_strided_slice %61 {offsets = [0, 6, 0], sizes = [8, 1, 16], strides = [1, 1, 1]} : vector<8x16x16xf32> to vector<8x1x16xf32>
    %75 = vector.shape_cast %74 : vector<8x1x16xf32> to vector<8x16xf32>
    %76 = vector.extract_strided_slice %61 {offsets = [0, 7, 0], sizes = [8, 1, 16], strides = [1, 1, 1]} : vector<8x16x16xf32> to vector<8x1x16xf32>
    %77 = vector.shape_cast %76 : vector<8x1x16xf32> to vector<8x16xf32>
    %78 = vector.extract_strided_slice %61 {offsets = [0, 8, 0], sizes = [8, 1, 16], strides = [1, 1, 1]} : vector<8x16x16xf32> to vector<8x1x16xf32>
    %79 = vector.shape_cast %78 : vector<8x1x16xf32> to vector<8x16xf32>
    %80 = vector.extract_strided_slice %61 {offsets = [0, 9, 0], sizes = [8, 1, 16], strides = [1, 1, 1]} : vector<8x16x16xf32> to vector<8x1x16xf32>
    %81 = vector.shape_cast %80 : vector<8x1x16xf32> to vector<8x16xf32>
    %82 = vector.extract_strided_slice %61 {offsets = [0, 10, 0], sizes = [8, 1, 16], strides = [1, 1, 1]} : vector<8x16x16xf32> to vector<8x1x16xf32>
    %83 = vector.shape_cast %82 : vector<8x1x16xf32> to vector<8x16xf32>
    %84 = vector.extract_strided_slice %61 {offsets = [0, 11, 0], sizes = [8, 1, 16], strides = [1, 1, 1]} : vector<8x16x16xf32> to vector<8x1x16xf32>
    %85 = vector.shape_cast %84 : vector<8x1x16xf32> to vector<8x16xf32>
    %86 = vector.extract_strided_slice %61 {offsets = [0, 12, 0], sizes = [8, 1, 16], strides = [1, 1, 1]} : vector<8x16x16xf32> to vector<8x1x16xf32>
    %87 = vector.shape_cast %86 : vector<8x1x16xf32> to vector<8x16xf32>
    %88 = vector.extract_strided_slice %61 {offsets = [0, 13, 0], sizes = [8, 1, 16], strides = [1, 1, 1]} : vector<8x16x16xf32> to vector<8x1x16xf32>
    %89 = vector.shape_cast %88 : vector<8x1x16xf32> to vector<8x16xf32>
    %90 = vector.extract_strided_slice %61 {offsets = [0, 14, 0], sizes = [8, 1, 16], strides = [1, 1, 1]} : vector<8x16x16xf32> to vector<8x1x16xf32>
    %91 = vector.shape_cast %90 : vector<8x1x16xf32> to vector<8x16xf32>
    %92 = vector.extract_strided_slice %61 {offsets = [0, 15, 0], sizes = [8, 1, 16], strides = [1, 1, 1]} : vector<8x16x16xf32> to vector<8x1x16xf32>
    %93 = vector.shape_cast %92 : vector<8x1x16xf32> to vector<8x16xf32>
    %94 = tpu.concatenate %63, %65, %67, %69, %71, %73, %75, %77, %79, %81, %83, %85, %87, %89, %91, %93 in 1 : vector<8x16xf32>, vector<8x16xf32>, vector<8x16xf32>, vector<8x16xf32>, vector<8x16xf32>, vector<8x16xf32>, vector<8x16xf32>, vector<8x16xf32>, vector<8x16xf32>, vector<8x16xf32>, vector<8x16xf32>, vector<8x16xf32>, vector<8x16xf32>, vector<8x16xf32>, vector<8x16xf32>, vector<8x16xf32> -> vector<8x256xf32>
    %95 = tpu.concatenate %59, %94 in 1 : vector<8x256xf32>, vector<8x256xf32> -> vector<8x512xf32>
    %c0_14 = arith.constant 0 : index
    %c0_15 = arith.constant 0 : index
    %c0_16 = arith.constant 0 : index
    %96 = vector.load %arg6[%c0_14, %c0_15, %c0_16] : memref<1x8x512xf32, #tpu.memory_space<vmem>>, vector<1x8x512xf32>
    %97 = vector.shape_cast %96 : vector<1x8x512xf32> to vector<8x512xf32>
    %98 = vector.shape_cast %95 : vector<8x512xf32> to vector<1x8x512xf32>
    tpu.vector_store %arg6[%c0_14, %c0_15, %c0_16], %98 {strides = array<i32>} : memref<1x8x512xf32, #tpu.memory_space<vmem>>, vector<1x8x512xf32>,
    return
  }
  func.func @transform_0(%arg0: i32, %arg1: i32) -> (i32, i32, i32, i32) {
    %c0_i32 = arith.constant 0 : i32
    %c0_i32_0 = arith.constant 0 : i32
    %c0_i32_1 = arith.constant 0 : i32
    return %arg0, %arg1, %c0_i32, %c0_i32_0 : i32, i32, i32, i32
  }
  func.func @transform_1(%arg0: i32, %arg1: i32) -> (i32, i32, i32, i32) {
    %c1_i32 = arith.constant 1 : i32
    %0 = arith.addi %arg1, %c1_i32 : i32
    %c4_i32 = arith.constant 4 : i32
    %1 = arith.muli %0, %c4_i32 : i32
    %c0_i32 = arith.constant 0 : i32
    %c0_i32_0 = arith.constant 0 : i32
    %c0_i32_1 = arith.constant 0 : i32
    return %arg0, %1, %c0_i32, %c0_i32_0 : i32, i32, i32, i32
  }
  func.func @transform_2(%arg0: i32, %arg1: i32) -> (i32, i32, i32) {
    %c0_i32 = arith.constant 0 : i32
    %c0_i32_0 = arith.constant 0 : i32
    %c0_i32_1 = arith.constant 0 : i32
    return %arg0, %c0_i32, %c0_i32_0 : i32, i32, i32
  }
  func.func @transform_3(%arg0: i32, %arg1: i32) -> (i32, i32, i32) {
    %c0_i32 = arith.constant 0 : i32
    %c0_i32_0 = arith.constant 0 : i32
    %c0_i32_1 = arith.constant 0 : i32
    return %arg0, %c0_i32, %c0_i32_0 : i32, i32, i32
  }
  func.func @transform_4(%arg0: i32, %arg1: i32) -> (i32, i32, i32) {
    %c0_i32 = arith.constant 0 : i32
    %c0_i32_0 = arith.constant 0 : i32
    return %arg0, %arg1, %c0_i32 : i32, i32, i32
  }
}

</mosaic_0001>

<bundles_post_ra>
// kernel: up_conv_sk_forward.1
= control target key start
LH: loop header
LB: loop body
LE: loop exit
PB: predicated region body
PF: predicated region fallthrough
CT: control target
= control target key end

     0   :  { %s1806_s15 = smov 0   ;;  %s1808_s16 = smov 0   ;;  %s2622_s0 = inlined_call_operand.vmem [shape: bf16[2,18,18,4], index: 0, kind: input, shape index: {}, may-alias: {0,1}]   ;;  %s2623_s1 = inlined_call_operand.vmem [shape: bf16[2,18,18,4], index: 1, kind: input, shape index: {}, may-alias: {0,1}]   ;;  %s2624_s2 = inlined_call_operand.vmem [shape: bf16[2,36,32], index: 2, kind: input, shape index: {}]   ;;  %s2625_s3 = inlined_call_operand.vmem [shape: f32[2,1,32], index: 3, kind: input, shape index: {}]   ;;  %s2626_s4 = inlined_call_operand.vmem [shape: f32[2,16,512], index: 4, kind: output, shape index: {}]  }
   0x1   :  { %s1810_s17 = smov 0   ;;  %s1812_s18 = smov 0  }
   0x2   :  { %s1814_s19 = smov 0  }
   0x3 LB: > { %s23_s20 = sadd.s32 1, %s1758_s17  ;;  %s26_s21 = sadd.s32 1, %s1762_s18  ;;  %s1766_s19 = sphi %s1814_s19, %s14_s19   ;;  %s1762_s18 = sphi %s1812_s18, %s2633_s18   ;;  %s1758_s17 = sphi %s1810_s17, %s2632_s17   ;;  %s1754_s16 = sphi %s1808_s16, %s2631_s16   ;;  %s1750_s15 = sphi %s1806_s15, %s2630_s15  }
   0x4   : > { %p24_p0 = scmp.ge.s32.totalorder %s23_s20, 2  ;;  %p1554_p1 = scmp.ge.s32.totalorder %s1766_s19, 1 }
   0x5   : > { %p238_p2 = scmp.lt.s32.totalorder %s1766_s19, 5 }
   0x6   : > { %s2635_s20 = smov (%p24_p0, %s23_s20), 0  ;;  %s2637_s21 = smov (!%p24_p0, %s26_s21), %s1762_s18 }
   0x7   : > { %p239_p3 = pnand %p1554_p1, %p238_p2  ;;  %p28_p4 = scmp.ge.s32.totalorder %s2637_s21, 2 }
   0x8   : > { %s1839_s22 = sshll.u32 (!%p239_p3), %s1750_s15, 3  ;;  %p304_p5 = scmp.lt.s32.totalorder (!%p239_p3), %s1754_s16, 1  ;;  %vm559_vm0 = vcmask (!%p239_p3), 1046528   ;;  %vm446_vm1 = vsmask.f32 (!%p239_p3), 7424  ;;  %vm922_vm2 = vcmask (!%p239_p3), 1041408  }
   0x9   : > { %s2639_s21 = smov (%p28_p4, %s2637_s21), 0  ;;  %242 = sbr.rel (%p239_p3) target bundleno = 663 (0x297), region = 36 }
   0xa   : > { %p306_p6 = scmp.lt.s32.totalorder (!%p239_p3), %s1839_s22, 17  ;;  %s1606_s5 = sadd.s32 (!%p239_p3), 8, %s1839_s22  ;;  %vm742_vm3 = vcmask (!%p239_p3), 31744   ;;  %vm759_vm4 = vcmask (!%p239_p3), 64512   ;;  %vm776_vm5 = vcmask (!%p239_p3), 97280   ;;  %vm793_vm6 = vcmask (!%p239_p3), 130048  }
   0xb   : > { %s1768_s6 = smov (!%p239_p3), 12   ;;  %s1769_s7 = smov (!%p239_p3), 8   ;;  %vm810_vm7 = vcmask (!%p239_p3), 162816   ;;  %vm827_vm8 = vcmask (!%p239_p3), 195584   ;;  %vm844_vm9 = vcmask (!%p239_p3), 228352   ;;  %vm861_vm10 = vcmask (!%p239_p3), 261120  }
   0xc   : > { %p1892_p7 = scmp.lt.s32.totalorder (!%p239_p3), %s1606_s5, 17  ;;  %s1770_s9 = smov (!%p239_p3), 4   ;;  %vm905_vm11 = vcmask (!%p239_p3), 293888   ;;  %vm1048_vm12 = vcmask (!%p239_p3), 1041409   ;;  %vm1051_vm13 = vcmask (!%p239_p3), 1042434   ;;  %vm1054_vm14 = vcmask (!%p239_p3), 1043459  }
   0xd   : > { %s1771_s10 = smov (!%p239_p3), 20   ;;  %s1772_s13 = smov (!%p239_p3), 16   ;;  %vm1057_vm15 = vcmask (!%p239_p3), 1044484  }
   0xe   : > { %p344_p8 = scmp.lt.s32.totalorder (!%p239_p3), %s1750_s15, 1 }
  0x10   : > { %s2641_s16 = smov (!%p304_p5, %s1754_s16), 1  ;;  %s2643_s5 = smov (!%p1892_p7, %s1606_s5), 17 }
  0x11   : > { %s307_s23 = scalar_select %p306_p6, %s1839_s22, 17 }
  0x12   : > { %s1649_s24 = smul.u32 54, %s2641_s16  ;;  %s341_s8 = scalar_lea.vmem %s2625_s3, %s2641_s16 }
  0x13   : > { %s1648_s25 = smul.u32 3, %s307_s23  ;;  %s2645_s15 = smov (!%p344_p8, %s1750_s15), 1 }
  0x14   : > { %s1650_s11 = smul.u32 3, %s2643_s5  ;;  %s1775_s5 = smov 32  }
  0x15   : > { %s310_s26 = sadd.s32 %s1649_s24, %s1648_s25  ;;  %s1773_s25 = smov 24  }
  0x16   : > { %s1556_s27 = sshll.u32 %s310_s26, 2  ;;  %s328_s12 = sadd.s32 %s1650_s11, %s1649_s24 }
  0x17   : > { %s1851_s30 = scalar_lea.vmem %s2622_s0, %s1556_s27  ;;  %s1559_s14 = sshll.u32 %s328_s12, 2 }
  0x18   : > { %v1854_v0 = vld [vmem:[%s1851_s30 + $0x18] sm:$0xff]   ;;  %v1857_v1 = vld [vmem:[%s1851_s30 + $0xc] sm:$0xff]   ;;  %v1865_v2 = vld [vmem:[%s1851_s30] sm:$0xff]   ;;  %s1938_s24 = scalar_lea.vmem %s2623_s1, %s1559_s14  ;;  %s1651_s26 = smul.u32 20, %s2641_s16 }
  0x19   : > { %607 = vrot.lane.b32.xlu1 %v1854_v0, %s1768_s6  ;;  %605 = vrot.lane.b32.xlu0 %v1857_v1, %s1768_s6  ;;  %v1708_v3 = vld [vmem:[%s1851_s30 + $0x8] ss:$0 sps:$4 sm:$0x11]   ;;  %v1709_v4 = vld [vmem:[%s1851_s30 + $0x14] ss:$0 sps:$4 sm:$0x11]  }
  0x1a   : > { %v563_v5 = vrot.slane %v1857_v1, 1  ;;  %v460_v6 = vshrl.u32 %v1857_v1, 16  ;;  %v462_v7 = vshll.u32 %v1857_v1, 16  ;;  %v560_v8 = vrot.slane %v1865_v2, 1  ;;  %v1877_v18 = vld [vmem:[%s1851_s30 + $0x30] sm:$0xff]   ;;  %v1888_v28 = vld [vmem:[%s1851_s30 + $0x3c] sm:$0xff]   ;;  %s338_s29 = scalar_lea.vmem %s2624_s2, %s1651_s26 }
  0x1b   : > { %v561_v9 = vrot.slane %v1708_v3, 1  ;;  %v448_v10 = vshrl.u32 %v1865_v2, 16  ;;  %v450_v11 = vshll.u32 %v1865_v2, 16  ;;  %v455_v12 = vshll.u32 %v1708_v3, 16  ;;  %v1920_v49 = vld [vmem:[%s1851_s30 + $0x54] sm:$0xff]   ;;  %v1946_v61 = vld [vmem:[%s1938_s24] sm:$0xff]  }
  0x1c   : > { %v564_v13 = vrot.slane %v1709_v4, 1  ;;  %v464_v14 = vrot.slane %v462_v7, 1  ;;  %v467_v15 = vshll.u32 %v1709_v4, 16  ;;  %v1711_v21 = vld [vmem:[%s1851_s30 + $0x38] ss:$0 sps:$4 sm:$0x11]  }
  0x1d   : > { %v562_v16 = vsel %vm559_vm0, %v560_v8, %v561_v9  ;;  %v452_v17 = vrot.slane %v450_v11, 1  ;;  %v457_v19 = vrot.slane %v455_v12, 1  ;;  %v1883_v25 = vld [vmem:[%s1851_s30 + $0x20] ss:$0 sps:$4 sm:$0x11]   ;;  %v474_v26 = vshll.u32 %v1854_v0, 16 }
  0x1e   : > { %584 = vrot.lane.b32.xlu1 %v562_v16, %s1769_s7  ;;  %v565_v20 = vsel %vm559_vm0, %v563_v5, %v564_v13  ;;  %v465_v23 = vor.u32 %v464_v14, %v460_v6  ;;  %v469_v24 = vrot.slane %v467_v15, 1  ;;  %v498_v27 = vshll.u32 %v1877_v18, 16  ;;  %v1905_v39 = vld [vmem:[%s1851_s30 + $0x44] ss:$0 sps:$4 sm:$0x11]   ;;  %v1953_v4 = vld [vmem:[%s1938_s24 + $0xc] sm:$0xff]  }
  0x1f   : > { %v453_v22 = vor.u32 %v452_v17, %v448_v10  ;;  %v572_v30 = vrot.slane %v1877_v18, 1  ;;  %v573_v31 = vrot.slane %v1711_v21, 1  ;;  %v472_v32 = vshrl.u32 %v1854_v0, 16  ;;  %v1720_v57 = vld [vmem:[%s1851_s30 + $0x5c] ss:$0 sps:$4 sm:$0x11]  }
  0x20   : > { %v476_v33 = vrot.slane %v474_v26, 1  ;;  %v479_v34 = vshll.u32 %v1883_v25, 16  ;;  %v496_v35 = vshrl.u32 %v1877_v18, 16  ;;  %v503_v36 = vshll.u32 %v1711_v21, 16  ;;  %v1976_v21 = vld [vmem:[%s1851_s30 + $0x24] sm:$0xff]   ;;  %s1778_s11 = smov 64  }
  0x21   : > { %v458_v29 = vsel %vm446_vm1, %v453_v22, %v457_v19  ;;  %v470_v37 = vsel %vm446_vm1, %v465_v23, %v469_v24  ;;  %v500_v38 = vrot.slane %v498_v27, 1  ;;  %v510_v40 = vshll.u32 %v1888_v28, 16  ;;  %v1722_v6 = vld [vmem:[%s1938_s24 + $0x8] ss:$0 sps:$4 sm:$0x11]   ;;  %s1779_s12 = smov 80  }
  0x22   : > { %543 = vrot.lane.b32.xlu0 %v458_v29, %s1770_s9  ;;  %586 = vrot.lane.b32.xlu1 %v565_v20, %s1769_s7  ;;  %v1915_v41 = vsel %vm559_vm0, %v572_v30, %v573_v31  ;;  %v477_v42 = vor.u32 %v476_v33, %v472_v32  ;;  %v481_v43 = vrot.slane %v479_v34, 1  ;;  %v505_v44 = vrot.slane %v503_v36, 1  ;;  %v1724_v23 = vld [vmem:[%s1938_s24 + $0x14] ss:$0 sps:$4 sm:$0x11]   ;;  %s1561_s14 = sshll.u32 %s2645_s15, 2 }
  0x23   : > { %v501_v45 = vor.u32 %v500_v38, %v496_v35  ;;  %v508_v46 = vshrl.u32 %v1888_v28, 16  ;;  %v512_v47 = vrot.slane %v510_v40, 1  ;;  %v515_v48 = vshll.u32 %v1905_v39, 16  ;;  %v1717_v33 = vld [vmem:[%s1851_s30 + $0x2c] ss:$0 sps:$4 sm:$0x11]  }
  0x24   : > { %v1928_v50 = vsel %vm446_vm1, %v477_v42, %v481_v43  ;;  %v566_v51 = vrot.slane %v1854_v0, 1  ;;  %v567_v55 = vrot.slane %v1883_v25, 1  ;;  %v575_v56 = vrot.slane %v1888_v28, 1  ;;  %v1984_v25 = vld [vmem:[%s1851_s30 + $0x48] sm:$0xff]   ;;  %v1725_v43 = vld [vmem:[%s338_s29] sm:$0xff]   ;;  %s1562_s22 = sshll.u32 %s2641_s16, 3 }
  0x25   : > { %v1932_v52 = vsel %vm446_vm1, %v501_v45, %v505_v44  ;;  %v513_v53 = vor.u32 %v512_v47, %v508_v46  ;;  %v517_v54 = vrot.slane %v515_v48, 1  ;;  %v532_v58 = vshrl.u32 %v1920_v49, 16  ;;  %v1992_v34 = vld [vmem:[%s1851_s30 + $0x50] ss:$0 sps:$4 sm:$0x11]   ;;  %v1726_v45 = vld [vmem:[%s338_s29 + $0x8] sm:$0xff]   ;;  %1618 = vmatprep.subr.bf16.mxu0 %v1725_v43  ;;  %1640 = vmatprep.subr.bf16.mxu1 %v1725_v43  ;;  %s348_s23 = sadd.s32 %s1562_s22, %s1561_s14 }
  0x26   : > { %545 = vrot.lane.b32.xlu0 %v470_v37, %s1770_s9  ;;  %655 = vrot.lane.b32.xlu1 %v565_v20, %s1771_s10  ;;  %v534_v59 = vshll.u32 %v1920_v49, 16  ;;  %v581_v60 = vrot.slane %v1920_v49, 1  ;;  %v539_v63 = vshll.u32 %v1720_v57, 16  ;;  %v582_v3 = vrot.slane %v1720_v57, 1  ;;  %s1774_s30 = smov 28   ;;  %s1563_s24 = sshll.u32 %s348_s23, 3 }
  0x27   : > { %v1956_v5 = vsel %vm446_vm1, %v513_v53, %v517_v54  ;;  %v625_v7 = vshrl.u32 %v1946_v61, 16  ;;  %v627_v8 = vshll.u32 %v1946_v61, 16  ;;  %v652_v9 = vrot.slane %v1946_v61, 1  ;;  %1619 = vmatpush3.bf16.msra.mxu0 %v1725_v43  ;;  %1643 = vmatpush3.bf16.msra.mxu1 %v1725_v43 }
  0x28   : > { %v536_v62 = vrot.slane %v534_v59, 1  ;;  %v541_v11 = vrot.slane %v539_v63, 1  ;;  %v1963_v12 = vsel %vm559_vm0, %v581_v60, %v582_v3  ;;  %v696_v13 = vshrl.u32 %v1953_v4, 16  ;;  %1620 = vmatprep.subr.bf16.mxu0 %v1726_v45  ;;  %1641 = vmatprep.subr.bf16.mxu1 %v1726_v45 }
  0x29   : > { %v629_v14 = vrot.slane %v627_v8, 1  ;;  %v632_v15 = vshll.u32 %v1722_v6, 16  ;;  %v653_v16 = vrot.slane %v1722_v6, 1  ;;  %v698_v17 = vshll.u32 %v1953_v4, 16 }
  0x2a   : > { %636 = vrot.lane.b32.xlu0 %v470_v37, %s1772_s13  ;;  %592 = vrot.lane.b32.xlu1 %v1915_v41, %s1769_s7  ;;  %v537_v10 = vor.u32 %v536_v62, %v532_v58  ;;  %v1972_v19 = vsel %vm559_vm0, %v566_v51, %v567_v55  ;;  %v576_v20 = vrot.slane %v1905_v39, 1  ;;  %v723_v24 = vrot.slane %v1953_v4, 1  ;;  %v1727_v55 = vld [vmem:[%s338_s29 + $0x10] ss:$0 sps:$4 sm:$0x33]  }
  0x2b   : > { %v630_v26 = vor.u32 %v629_v14, %v625_v7  ;;  %v634_v27 = vrot.slane %v632_v15, 1  ;;  %v1987_v29 = vsel %vm559_vm0, %v652_v9, %v653_v16  ;;  %v700_v30 = vrot.slane %v698_v17, 1  ;;  %1621 = vmatpush3.bf16.msra.mxu0 %v1726_v45  ;;  %1644 = vmatpush3.bf16.msra.mxu1 %v1726_v45 }
  0x2c   : > { %v1979_v22 = vsel %vm446_vm1, %v537_v10, %v541_v11  ;;  %v703_v31 = vshll.u32 %v1724_v23, 16  ;;  %v724_v32 = vrot.slane %v1724_v23, 1  ;;  %v486_v37 = vshll.u32 %v1976_v21, 16  ;;  %1646 = vmatprep.subr.msk.bf16.mxu0 %vm922_vm2, %v1727_v55  ;;  %1647 = vmatprep.subr.msk.bf16.mxu1 %vm922_vm2, %v1727_v55 }
  0x2d   : > { %v1995_v35 = vsel %vm446_vm1, %v630_v26, %v634_v27  ;;  %v701_v36 = vor.u32 %v700_v30, %v696_v13  ;;  %v2009_v40 = vsel %vm559_vm0, %v575_v56, %v576_v20  ;;  %v522_v42 = vshll.u32 %v1984_v25, 16 }
  0x2e   : > { %638 = vrot.lane.b32.xlu0 %v1928_v50, %s1772_s13  ;;  %551 = vrot.lane.b32.xlu1 %v1932_v52, %s1770_s9  ;;  %v705_v38 = vrot.slane %v703_v31, 1  ;;  %v2006_v39 = vsel %vm559_vm0, %v723_v24, %v724_v32  ;;  %v484_v46 = vshrl.u32 %v1976_v21, 16  ;;  %v520_v47 = vshrl.u32 %v1984_v25, 16 }
  0x2f   : > { %v488_v48 = vrot.slane %v486_v37, 1  ;;  %v491_v51 = vshll.u32 %v1717_v33, 16  ;;  %v524_v53 = vrot.slane %v522_v42, 1  ;;  %v527_v54 = vshll.u32 %v1992_v34, 16 }
  0x30   : > { %v2013_v44 = vsel %vm446_vm1, %v701_v36, %v705_v38  ;;  %v924_v60 = vsel %vm922_vm2, %v1727_v55, 0  ;;  %v569_v3 = vrot.slane %v1976_v21, 1  ;;  %v570_v6 = vrot.slane %v1717_v33, 1 }
  0x31   : > { %v489_v56 = vor.u32 %v488_v48, %v484_v46  ;;  %v493_v57 = vrot.slane %v491_v51, 1  ;;  %v525_v58 = vor.u32 %v524_v53, %v520_v47  ;;  %v529_v59 = vrot.slane %v527_v54, 1  ;;  %1623 = vmatpush3.bf16.msra.mxu0 %v924_v60  ;;  %1645 = vmatpush3.bf16.msra.mxu1 %v924_v60 }
  0x32   : > { %553 = vrot.lane.b32.xlu0 %v1956_v5, %s1770_s9  ;;  %676 = vrot.lane.b32.xlu1 %v1854_v0, %s1773_s25  ;;  %v571_v7 = vsel %vm559_vm0, %v569_v3, %v570_v6  ;;  %v578_v8 = vrot.slane %v1984_v25, 1  ;;  %v579_v9 = vrot.slane %v1992_v34, 1  ;;  %vm1066_vm2 = vcmask 1047559  }
  0x33   : > { %v494_v62 = vsel %vm446_vm1, %v489_v56, %v493_v57  ;;  %v530_v63 = vsel %vm446_vm1, %v525_v58, %v529_v59  ;;  %vm1063_vm1 = vcmask 1046534  }
  0x34   : > { %v580_v10 = vsel %vm559_vm0, %v578_v8, %v579_v9  ;;  %vm1060_vm0 = vcmask 1045509  }
  0x36   : > { %657 = vrot.lane.b32.xlu0 %v1972_v19, %s1771_s10  ;;  %613 = vrot.lane.b32.xlu1 %v1888_v28, %s1768_s6 }
  0x3a   : > { %594 = vrot.lane.b32.xlu0 %v2009_v40, %s1769_s7  ;;  %707 = vrot.lane.b32.xlu1 %v1928_v50, %s1774_s30 }
  0x3e   : > { %678 = vrot.lane.b32.xlu0 %v1976_v21, %s1773_s25  ;;  %644 = vrot.lane.b32.xlu1 %v1956_v5, %s1772_s13 }
  0x42   : > { %615 = vrot.lane.b32.xlu0 %v1984_v25, %s1768_s6  ;;  %726 = vrot.lane.b32.xlu1 %v1972_v19, %s1775_s5 }
  0x46   : > { %709 = vrot.lane.b32.xlu0 %v494_v62, %s1774_s30  ;;  %646 = vrot.lane.b32.xlu1 %v530_v63, %s1772_s13 }
  0x4a   : > { %547 = vrot.lane.b32.xlu0 %v1928_v50, %s1770_s9  ;;  %728 = vrot.lane.b32.xlu1 %v571_v7, %s1775_s5 }
  0x4e   : > { %663 = vrot.lane.b32.xlu0 %v2009_v40, %s1771_s10  ;;  %588 = vrot.lane.b32.xlu1 %v1972_v19, %s1769_s7 }
  0x52   : > { %549 = vrot.lane.b32.xlu0 %v494_v62, %s1770_s9  ;;  %684 = vrot.lane.b32.xlu1 %v1984_v25, %s1773_s25 }
  0x56   : > { %665 = vrot.lane.b32.xlu0 %v580_v10, %s1771_s10  ;;  %609 = vrot.lane.b32.xlu1 %v1976_v21, %s1768_s6 }
  0x5a   : > { %590 = vrot.lane.b32.xlu0 %v571_v7, %s1769_s7  ;;  %715 = vrot.lane.b32.xlu1 %v530_v63, %s1774_s30 }
  0x5e   : > { %686 = vrot.lane.b32.xlu0 %v1920_v49, %s1773_s25  ;;  %640 = vrot.lane.b32.xlu1 %v494_v62, %s1772_s13 }
  0x62   : > { %611 = vrot.lane.b32.xlu0 %v1877_v18, %s1768_s6  ;;  %734 = vrot.lane.b32.xlu1 %v580_v10, %s1775_s5 }
  0x66   : > { %717 = vrot.lane.b32.xlu0 %v1979_v22, %s1774_s30  ;;  %642 = vrot.lane.b32.xlu1 %v1932_v52, %s1772_s13 }
  0x6a   : > { %555 = vrot.lane.b32.xlu0 %v530_v63, %s1770_s9  ;;  %736 = vrot.lane.b32.xlu1 %v1963_v12, %s1775_s5 }
  0x6e   : > { %659 = vrot.lane.b32.xlu0 %v571_v7, %s1771_s10  ;;  %596 = vrot.lane.b32.xlu1 %v580_v10, %s1769_s7 }
  0x72   : > { %557 = vrot.lane.b32.xlu0 %v1979_v22, %s1770_s9  ;;  %680 = vrot.lane.b32.xlu1 %v1877_v18, %s1773_s25  ;;  %s1776_s9 = smov 112  }
  0x76   : > { %661 = vrot.lane.b32.xlu0 %v1915_v41, %s1771_s10  ;;  %617 = vrot.lane.b32.xlu1 %v1920_v49, %s1768_s6 }
  0x7a   : > { %598 = vrot.lane.b32.xlu0 %v1963_v12, %s1769_s7  ;;  %711 = vrot.lane.b32.xlu1 %v1932_v52, %s1774_s30 }
  0x7e   : > { %682 = vrot.lane.b32.xlu0 %v1888_v28, %s1773_s25  ;;  %648 = vrot.lane.b32.xlu1 %v1979_v22, %s1772_s13 }
  0x82   : > { %619 = vrot.lane.b32.xlu0 %v1946_v61, %s1768_s6  ;;  %730 = vrot.lane.b32.xlu1 %v1915_v41, %s1775_s5 }
  0x86   : > { %713 = vrot.lane.b32.xlu0 %v1956_v5, %s1774_s30  ;;  %667 = vrot.lane.b32.xlu1 %v1963_v12, %s1771_s10 }
  0x8a   : > { %650 = vrot.lane.b32.xlu0 %v1995_v35, %s1772_s13  ;;  %669 = vrot.lane.b32.xlu1 %v1987_v29, %s1771_s10  ;;  %s1777_s10 = smov 48  }
  0x8b   : > { %v608_v50 = vpop.permute.xlu1 %607  ;;  %v606_v41 = vpop.permute.xlu0 %605 }
  0x8e   : > { %732 = vrot.lane.b32.xlu0 %v2009_v40, %s1775_s5  ;;  %690 = vrot.lane.b32.xlu1 %v1953_v4, %s1773_s25 }
  0x90   : > { %v585_v52 = vpop.permute.xlu1 %584 }
  0x92   : > { %688 = vrot.lane.b32.xlu0 %v1946_v61, %s1773_s25  ;;  %721 = vrot.lane.b32.xlu1 %v2013_v44, %s1774_s30  ;;  %s350_s25 = scalar_lea.vmem %s2626_s4, %s1563_s24 }
  0x94   : > { %v544_v5 = vpop.permute.xlu0 %543  ;;  %v587_v11 = vpop.permute.xlu1 %586 }
  0x95   : > { %v744_v19 = vsel %vm742_vm3, %v1865_v2, %v544_v5 }
  0x96   : > { %719 = vrot.lane.b32.xlu0 %v1995_v35, %s1774_s30  ;;  %740 = vrot.lane.b32.xlu1 %v2006_v39, %s1775_s5  ;;  %v761_v23 = vsel %vm759_vm4, %v744_v19, %v585_v52 }
  0x97   : > { %v778_v27 = vsel %vm776_vm5, %v761_v23, %v606_v41 }
  0x98   : > { %v546_v12 = vpop.permute.xlu0 %545  ;;  %v656_v13 = vpop.permute.xlu1 %655 }
  0x99   : > { %v746_v2 = vsel %vm742_vm3, %v1857_v1, %v546_v12 }
  0x9a   : > { %738 = vrot.lane.b32.xlu0 %v1987_v29, %s1775_s5  ;;  %v763_v37 = vsel %vm759_vm4, %v746_v2, %v587_v11 }
  0x9b   : > { %v780_v39 = vsel %vm776_vm5, %v763_v37, %v608_v50 }
  0x9c   : > { %v637_v4 = vpop.permute.xlu0 %636  ;;  %v593_v14 = vpop.permute.xlu1 %592 }
  0x9d   : > { %v795_v29 = vsel %vm793_vm6, %v778_v27, %v637_v4 }
  0x9e   : > { %v812_v32 = vsel %vm810_vm7, %v795_v29, %v656_v13 }
  0xa0   : > { %v639_v15 = vpop.permute.xlu0 %638  ;;  %v552_v61 = vpop.permute.xlu1 %551 }
  0xa1   : > { %v797_v42 = vsel %vm793_vm6, %v780_v39, %v639_v15  ;;  %v752_v58 = vsel %vm742_vm3, %v1877_v18, %v552_v61 }
  0xa2   : > { %v769_v62 = vsel %vm759_vm4, %v752_v58, %v593_v14 }
  0xa4   : > { %v554_v16 = vpop.permute.xlu0 %553  ;;  %v677_v17 = vpop.permute.xlu1 %676 }
  0xa5   : > { %v829_v33 = vsel %vm827_vm8, %v812_v32, %v677_v17  ;;  %v754_v52 = vsel %vm742_vm3, %v1888_v28, %v554_v16 }
  0xa8   : > { %v658_v20 = vpop.permute.xlu0 %657  ;;  %v614_v22 = vpop.permute.xlu1 %613 }
  0xa9   : > { %v814_v43 = vsel %vm810_vm7, %v797_v42, %v658_v20  ;;  %v786_v63 = vsel %vm776_vm5, %v769_v62, %v614_v22 }
  0xac   : > { %v595_v24 = vpop.permute.xlu0 %594  ;;  %v708_v26 = vpop.permute.xlu1 %707 }
  0xad   : > { %v846_v34 = vsel %vm844_vm9, %v829_v33, %v708_v26  ;;  %v771_v5 = vsel %vm759_vm4, %v754_v52, %v595_v24 }
  0xb0   : > { %v679_v30 = vpop.permute.xlu0 %678  ;;  %v645_v31 = vpop.permute.xlu1 %644 }
  0xb1   : > { %v831_v44 = vsel %vm827_vm8, %v814_v43, %v679_v30  ;;  %v803_v7 = vsel %vm793_vm6, %v786_v63, %v645_v31 }
  0xb4   : > { %v616_v35 = vpop.permute.xlu0 %615  ;;  %v727_v36 = vpop.permute.xlu1 %726 }
  0xb5   : > { %v863_v38 = vsel %vm861_vm10, %v846_v34, %v727_v36  ;;  %v788_v11 = vsel %vm776_vm5, %v771_v5, %v616_v35 }
  0xb6   : > { %1624 = vmatprep.mubr.msk.bf16.mxu0 %vm905_vm11, %v863_v38 }
  0xb8   : > { %v710_v40 = vpop.permute.xlu0 %709  ;;  %v647_v1 = vpop.permute.xlu1 %646 }
  0xb9   : > { %v848_v45 = vsel %vm844_vm9, %v831_v44, %v710_v40  ;;  %v805_v4 = vsel %vm793_vm6, %v788_v11, %v647_v1 }
  0xbc   : > { %v548_v46 = vpop.permute.xlu0 %547  ;;  %v729_v47 = vpop.permute.xlu1 %728 }
  0xbd   : > { %v865_v48 = vsel %vm861_vm10, %v848_v45, %v729_v47  ;;  %v748_v30 = vsel %vm742_vm3, %v1854_v0, %v548_v46 }
  0xbe   : > { %1625 = vmatmul.mubr.msk.bf16.vlgmr.msra.gmra.mrb[0].mxu0 %vm905_vm11, %v865_v48 }
  0xc0   : > { %v664_v51 = vpop.permute.xlu0 %663  ;;  %v589_v53 = vpop.permute.xlu1 %588 }
  0xc1   : > { %v820_v8 = vsel %vm810_vm7, %v803_v7, %v664_v51  ;;  %v765_v31 = vsel %vm759_vm4, %v748_v30, %v589_v53 }
  0xc4   : > { %v550_v54 = vpop.permute.xlu0 %549  ;;  %v685_v55 = vpop.permute.xlu1 %684 }
  0xc5   : > { %v837_v9 = vsel %vm827_vm8, %v820_v8, %v685_v55  ;;  %v750_v42 = vsel %vm742_vm3, %v1976_v21, %v550_v54 }
  0xc8   : > { %v666_v56 = vpop.permute.xlu0 %665  ;;  %v610_v57 = vpop.permute.xlu1 %609 }
  0xc9   : > { %v822_v14 = vsel %vm810_vm7, %v805_v4, %v666_v56  ;;  %v782_v2 = vsel %vm776_vm5, %v765_v31, %v610_v57 }
  0xcc   : > { %v591_v59 = vpop.permute.xlu0 %590  ;;  %v716_v60 = vpop.permute.xlu1 %715 }
  0xcd   : > { %v854_v10 = vsel %vm844_vm9, %v837_v9, %v716_v60  ;;  %v767_v43 = vsel %vm759_vm4, %v750_v42, %v591_v59 }
  0xd0   : > { %v687_v3 = vpop.permute.xlu0 %686  ;;  %v641_v6 = vpop.permute.xlu1 %640 }
  0xd1   : > { %v839_v15 = vsel %vm827_vm8, %v822_v14, %v687_v3  ;;  %v799_v34 = vsel %vm793_vm6, %v782_v2, %v641_v6 }
  0xd4   : > { %v612_v50 = vpop.permute.xlu0 %611  ;;  %v735_v41 = vpop.permute.xlu1 %734 }
  0xd5   : > { %v871_v18 = vsel %vm861_vm10, %v854_v10, %v735_v41  ;;  %v784_v44 = vsel %vm776_vm5, %v767_v43, %v612_v50 }
  0xd6   : > { %1632 = vmatprep.mubr.msk.bf16.mxu1 %vm905_vm11, %v871_v18 }
  0xd8   : > { %v718_v12 = vpop.permute.xlu0 %717  ;;  %v643_v13 = vpop.permute.xlu1 %642 }
  0xd9   : > { %v856_v61 = vsel %vm844_vm9, %v839_v15, %v718_v12  ;;  %v801_v47 = vsel %vm793_vm6, %v784_v44, %v643_v13  ;;  %v2195_v12 = vld [vmem:[%s341_s8] ss:$0 sm:$0xff] }
  0xdc   : > { %v556_v17 = vpop.permute.xlu0 %555  ;;  %v737_v19 = vpop.permute.xlu1 %736 }
  0xdd   : > { %v873_v28 = vsel %vm861_vm10, %v856_v61, %v737_v19  ;;  %v756_v59 = vsel %vm742_vm3, %v1984_v25, %v556_v17 }
  0xde   : > { %1633 = vmatmul.mubr.msk.bf16.vlgmr.msra.gmra.mrb[0].mxu1 %vm905_vm11, %v873_v28 }
  0xe0   : > { %v660_v16 = vpop.permute.xlu0 %659  ;;  %v597_v20 = vpop.permute.xlu1 %596 }
  0xe1   : > { %v816_v35 = vsel %vm810_vm7, %v799_v34, %v660_v16  ;;  %v773_v62 = vsel %vm759_vm4, %v756_v59, %v597_v20 }
  0xe4   : > { %v558_v22 = vpop.permute.xlu0 %557  ;;  %v681_v23 = vpop.permute.xlu1 %680 }
  0xe5   : > { %v833_v36 = vsel %vm827_vm8, %v816_v35, %v681_v23  ;;  %v758_v54 = vsel %vm742_vm3, %v1920_v49, %v558_v22  ;;  %vm1332_vm3 = vcmask 392192  }
  0xe8   : > { %v662_v24 = vpop.permute.xlu0 %661  ;;  %v618_v26 = vpop.permute.xlu1 %617 }
  0xe9   : > { %v818_v48 = vsel %vm810_vm7, %v801_v47, %v662_v24  ;;  %v790_v3 = vsel %vm776_vm5, %v773_v62, %v618_v26 }
  0xec   : > { %v599_v27 = vpop.permute.xlu0 %598  ;;  %v712_v29 = vpop.permute.xlu1 %711 }
  0xed   : > { %v850_v37 = vsel %vm844_vm9, %v833_v36, %v712_v29  ;;  %v775_v60 = vsel %vm759_vm4, %v758_v54, %v599_v27  ;;  %vm1334_vm4 = vcmask 523264  }
  0xf0   : > { %v683_v32 = vpop.permute.xlu0 %682  ;;  %v649_v33 = vpop.permute.xlu1 %648 }
  0xf1   : > { %v835_v51 = vsel %vm827_vm8, %v818_v48, %v683_v32  ;;  %v807_v8 = vsel %vm793_vm6, %v790_v3, %v649_v33 }
  0xf4   : > { %v620_v38 = vpop.permute.xlu0 %619  ;;  %v731_v39 = vpop.permute.xlu1 %730 }
  0xf5   : > { %v867_v40 = vsel %vm861_vm10, %v850_v37, %v731_v39  ;;  %v792_v63 = vsel %vm776_vm5, %v775_v60, %v620_v38  ;;  %vm1336_vm5 = vcmask 654336  }
  0xf6   : > { %1628 = vmatprep.mubr.msk.bf16.mxu0 %vm905_vm11, %v867_v40 }
  0xf8   : > { %v714_v0 = vpop.permute.xlu0 %713  ;;  %v668_v1 = vpop.permute.xlu1 %667 }
  0xf9   : > { %v852_v53 = vsel %vm844_vm9, %v835_v51, %v714_v0  ;;  %v824_v49 = vsel %vm810_vm7, %v807_v8, %v668_v1 }
  0xfc   : > { %v651_v45 = vpop.permute.xlu0 %650  ;;  %v670_v46 = vpop.permute.xlu1 %669 }
  0xfd   : > { %v809_v6 = vsel %vm793_vm6, %v792_v63, %v651_v45 }
  0xfe   : > { %v826_v9 = vsel %vm810_vm7, %v809_v6, %v670_v46  ;;  %vm1338_vm7 = vcmask 785408  }
 0x100   : > { %v733_v55 = vpop.permute.xlu0 %732  ;;  %v691_v56 = vpop.permute.xlu1 %690 }
 0x101   : > { %v869_v57 = vsel %vm861_vm10, %v852_v53, %v733_v55  ;;  %v843_v50 = vsel %vm827_vm8, %v826_v9, %v691_v56 }
 0x102   : > { %1629 = vmatmul.mubr.msk.bf16.gmra.mrb[4].mxu0 %vm905_vm11, %v869_v57 }
 0x104   : > { %v689_v21 = vpop.permute.xlu0 %688  ;;  %v722_v58 = vpop.permute.xlu1 %721 }
 0x105   : > { %v841_v25 = vsel %vm827_vm8, %v824_v49, %v689_v21  ;;  %v860_v52 = vsel %vm844_vm9, %v843_v50, %v722_v58  ;;  %vm1340_vm8 = vcmask 916480  }
 0x108   : > { %v720_v7 = vpop.permute.xlu0 %719  ;;  %v741_v10 = vpop.permute.xlu1 %740 }
 0x109   : > { %v858_v41 = vsel %vm844_vm9, %v841_v25, %v720_v7  ;;  %v877_v11 = vsel %vm861_vm10, %v860_v52, %v741_v10 }
 0x10c   : > { %v739_v18 = vpop.permute.xlu0 %738 }
 0x10d   : > { %v875_v5 = vsel %vm861_vm10, %v858_v41, %v739_v18 }
 0x10e   : > { %1636 = vmatprep.mubr.msk.bf16.mxu1 %vm905_vm11, %v875_v5 }
 0x10f   : > { %1637 = vmatmul.mubr.msk.bf16.gmra.mrb[4].mxu1 %vm905_vm11, %v877_v11 }
 0x191   : > { %v1626_v13 = vpop.f32.mrb[0].mxu0 }
 0x192   : > { %v969_v4 = vadd.f32 %v1626_v13, %v2195_v12  ;;  %v960_v14 = vpop.f32.mrb[1].mxu0 }
 0x193   : > { %v961_v15 = vadd.f32 %v2195_v12, %v960_v14  ;;  %v1627_v61 = vpop.f32.mrb[2].mxu0 }
 0x194   : > { %v1025_v17 = vmax.f32 %v969_v4, 0.0  ;;  %v972_v19 = vadd.f32 %v1627_v61, %v2195_v12  ;;  %v963_v28 = vpop.f32.mrb[3].mxu0 }
 0x195   : > { %v1023_v16 = vmax.f32 %v961_v15, 0.0  ;;  %v964_v20 = vadd.f32 %v2195_v12, %v963_v28 }
 0x196   : > { %v1026_v22 = vmax.f32 %v972_v19, 0.0  ;;  %v1087_v23 = vrot.slane %v1025_v17, 1  ;;  %v1047_v24 = vrot.slane %v1025_v17, 7  ;;  %v1104_v26 = vrot.slane %v1025_v17, 2 }
 0x197   : > { %v1024_v27 = vmax.f32 %v964_v20, 0.0  ;;  %v1086_v29 = vrot.slane %v1023_v16, 2  ;;  %v1069_v30 = vrot.slane %v1023_v16, 1  ;;  %v1103_v31 = vrot.slane %v1023_v16, 3 }
 0x198   : > { %v1229_v2 = vrot.slane %v1026_v22, 1  ;;  %v2202_v32 = vsel %vm1048_vm12, %v1047_v24, %v1023_v16  ;;  %v1196_v33 = vrot.slane %v1026_v22, 7  ;;  %v1246_v34 = vrot.slane %v1026_v22, 2 }
 0x199   : > { %v2205_v35 = vsel %vm1048_vm12, %v1087_v23, %v1086_v29  ;;  %v1228_v36 = vrot.slane %v1024_v27, 2  ;;  %v2208_v37 = vsel %vm1048_vm12, %v1025_v17, %v1069_v30  ;;  %v1211_v38 = vrot.slane %v1024_v27, 1 }
 0x19a   : > { %v2211_v39 = vsel %vm1048_vm12, %v1196_v33, %v1024_v27  ;;  %v2214_v40 = vsel %vm1048_vm12, %v1104_v26, %v1103_v31  ;;  %v1245_v0 = vrot.slane %v1024_v27, 3  ;;  %v1120_v1 = vrot.slane %v1023_v16, 4 }
 0x19b   : > { %v2217_v42 = vsel %vm1048_vm12, %v1229_v2, %v1228_v36  ;;  %v2220_v43 = vsel %vm1048_vm12, %v1026_v22, %v1211_v38  ;;  %v1121_v44 = vrot.slane %v1025_v17, 3  ;;  %v1262_v45 = vrot.slane %v1024_v27, 4 }
 0x19c   : > { %v2223_v46 = vsel %vm1048_vm12, %v1246_v34, %v1245_v0  ;;  %v1263_v47 = vrot.slane %v1026_v22, 3  ;;  %v1137_v48 = vrot.slane %v1023_v16, 5  ;;  %v1138_v51 = vrot.slane %v1025_v17, 4 }
 0x19d   : > { %v2226_v53 = vsel %vm1048_vm12, %v1121_v44, %v1120_v1  ;;  %v1279_v55 = vrot.slane %v1024_v27, 5  ;;  %v1280_v56 = vrot.slane %v1026_v22, 4  ;;  %v1154_v57 = vrot.slane %v1023_v16, 6 }
 0x19e   : > { %v2229_v21 = vsel %vm1048_vm12, %v1263_v47, %v1262_v45  ;;  %v2232_v54 = vsel %vm1048_vm12, %v1138_v51, %v1137_v48  ;;  %v1155_v58 = vrot.slane %v1025_v17, 5  ;;  %v1296_v59 = vrot.slane %v1024_v27, 6 }
 0x19f   : > { %v2235_v60 = vsel %vm1048_vm12, %v1280_v56, %v1279_v55  ;;  %v1297_v62 = vrot.slane %v1026_v22, 5  ;;  %v1171_v63 = vrot.slane %v1023_v16, 7  ;;  %v1172_v3 = vrot.slane %v1025_v17, 6 }
 0x1a0   : > { %v2238_v6 = vsel %vm1048_vm12, %v1155_v58, %v1154_v57  ;;  %v1313_v7 = vrot.slane %v1024_v27, 7  ;;  %v1314_v8 = vrot.slane %v1026_v22, 6 }
 0x1a1   : > { %v2241_v49 = vsel %vm1048_vm12, %v1297_v62, %v1296_v59  ;;  %v2244_v9 = vsel %vm1048_vm12, %v1172_v3, %v1171_v63 }
 0x1a2   : > { %v2247_v25 = vsel %vm1048_vm12, %v1314_v8, %v1313_v7 }
 0x1b1   : > { %v1634_v10 = vpop.f32.mrb[0].mxu1 }
 0x1b2   : > { %v992_v50 = vpop.f32.mrb[1].mxu1  ;;  %v1001_v52 = vadd.f32 %v1634_v10, %v2195_v12 }
 0x1b3   : > { %v1635_v41 = vpop.f32.mrb[2].mxu1  ;;  %v993_v5 = vadd.f32 %v2195_v12, %v992_v50 }
 0x1b4   : > { %v995_v18 = vpop.f32.mrb[3].mxu1  ;;  %v1004_v11 = vadd.f32 %v1635_v41, %v2195_v12  ;;  %v2253_v4 = vmax.f32 %v1001_v52, 0.0 }
 0x1b5   : > { %v996_v13 = vadd.f32 %v2195_v12, %v995_v18  ;;  %v2255_v14 = vmax.f32 %v993_v5, 0.0 }
 0x1b6   : > { %v2257_v15 = vmax.f32 %v1004_v11, 0.0  ;;  %v1094_v19 = vrot.slane %v2253_v4, 5  ;;  %v1077_v28 = vrot.slane %v2253_v4, 4  ;;  %v1059_v16 = vrot.slane %v2253_v4, 3 }
 0x1b7   : > { %v2259_v61 = vmax.f32 %v996_v13, 0.0  ;;  %v1092_v17 = vrot.slane %v2255_v14, 6  ;;  %v1075_v22 = vrot.slane %v2255_v14, 5  ;;  %v1056_v24 = vrot.slane %v2255_v14, 4 }
 0x1b8   : > { %v1236_v20 = vrot.slane %v2257_v15, 5  ;;  %v1219_v23 = vrot.slane %v2257_v15, 4  ;;  %v1204_v29 = vrot.slane %v2257_v15, 3  ;;  %v1109_v30 = vrot.slane %v2255_v14, 7 }
 0x1b9   : > { %v1234_v26 = vrot.slane %v2259_v61, 6  ;;  %v1217_v27 = vrot.slane %v2259_v61, 5  ;;  %v1202_v2 = vrot.slane %v2259_v61, 4  ;;  %v1111_v33 = vrot.slane %v2253_v4, 6 }
 0x1ba   : > { %v1251_v34 = vrot.slane %v2259_v61, 7  ;;  %v1253_v36 = vrot.slane %v2257_v15, 6  ;;  %v1128_v1 = vrot.slane %v2253_v4, 7  ;;  %v1270_v44 = vrot.slane %v2257_v15, 7 }
 0x1bb   : > { %v1144_v45 = vrot.slane %v2255_v14, 1  ;;  %v1286_v51 = vrot.slane %v2259_v61, 1  ;;  %v1161_v55 = vrot.slane %v2255_v14, 2  ;;  %v1163_v56 = vrot.slane %v2253_v4, 1 }
 0x1bc   : > { %v1303_v62 = vrot.slane %v2259_v61, 2  ;;  %v1305_v63 = vrot.slane %v2257_v15, 1 }
 0x1d5   : > { %v1630_v31 = vpop.f32.mrb[4].mxu0 }
 0x1d6   : > { %v985_v38 = vadd.f32 %v1630_v31, %v2195_v12  ;;  %v976_v0 = vpop.f32.mrb[5].mxu0 }
 0x1d7   : > { %v977_v47 = vadd.f32 %v2195_v12, %v976_v0  ;;  %v1631_v48 = vpop.f32.mrb[6].mxu0 }
 0x1d8   : > { %v2285_v57 = vmax.f32 %v985_v38, 0.0  ;;  %v988_v58 = vadd.f32 %v1631_v48, %v2195_v12  ;;  %v979_v59 = vpop.f32.mrb[7].mxu0 }
 0x1d9   : > { %v2290_v3 = vmax.f32 %v977_v47, 0.0  ;;  %v980_v7 = vadd.f32 %v2195_v12, %v979_v59 }
 0x1da   : > { %v2295_v50 = vmax.f32 %v988_v58, 0.0  ;;  %v1090_v41 = vrot.slane %v2285_v57, 7  ;;  %v1073_v18 = vrot.slane %v2285_v57, 6  ;;  %v1053_v52 = vrot.slane %v2285_v57, 5 }
 0x1db   : > { %v2300_v5 = vmax.f32 %v980_v7, 0.0  ;;  %v1089_v11 = vsel %vm1051_vm13, %v2290_v3, %v2205_v35  ;;  %v1071_v13 = vrot.slane %v2290_v3, 7  ;;  %v1050_v31 = vrot.slane %v2290_v3, 6 }
 0x1dc   : > { %v1091_v38 = vsel %vm1054_vm14, %v1090_v41, %v1089_v11  ;;  %v1232_v0 = vrot.slane %v2295_v50, 7  ;;  %v1215_v47 = vrot.slane %v2295_v50, 6  ;;  %v1200_v48 = vrot.slane %v2295_v50, 5 }
 0x1dd   : > { %v1093_v58 = vsel %vm1057_vm15, %v1092_v17, %v1091_v38  ;;  %v1231_v59 = vsel %vm1051_vm13, %v2300_v5, %v2217_v42  ;;  %v1072_v35 = vsel %vm1051_vm13, %v1071_v13, %v2208_v37  ;;  %v1213_v7 = vrot.slane %v2300_v5, 7 }
 0x1de   : > { %v1095_v10 = vsel %vm1060_vm0, %v1094_v19, %v1093_v58  ;;  %v1233_v41 = vsel %vm1054_vm14, %v1232_v0, %v1231_v59  ;;  %v1074_v11 = vsel %vm1054_vm14, %v1073_v18, %v1072_v35  ;;  %v1052_v8 = vsel %vm1051_vm13, %v1050_v31, %v2202_v32 }
 0x1df   : > { %v1235_v17 = vsel %vm1057_vm15, %v1234_v26, %v1233_v41  ;;  %v1076_v38 = vsel %vm1057_vm15, %v1075_v22, %v1074_v11  ;;  %v1214_v42 = vsel %vm1051_vm13, %v1213_v7, %v2220_v43  ;;  %v1055_v37 = vsel %vm1054_vm14, %v1053_v52, %v1052_v8 }
 0x1e0   : > { %v1237_v13 = vsel %vm1060_vm0, %v1236_v20, %v1235_v17  ;;  %v1078_v19 = vsel %vm1060_vm0, %v1077_v28, %v1076_v38  ;;  %v1216_v0 = vsel %vm1054_vm14, %v1215_v47, %v1214_v42  ;;  %v1058_v18 = vsel %vm1057_vm15, %v1056_v24, %v1055_v37 }
 0x1e1   : > { %v1218_v32 = vsel %vm1057_vm15, %v1217_v27, %v1216_v0  ;;  %v1061_v22 = vsel %vm1060_vm0, %v1059_v16, %v1058_v18  ;;  %v1198_v26 = vrot.slane %v2300_v5, 6  ;;  %v1106_v43 = vrot.slane %v2290_v3, 1 }
 0x1e2   : > { %v1638_v8 = vpop.f32.mrb[4].mxu1  ;;  %v1220_v28 = vsel %vm1060_vm0, %v1219_v23, %v1218_v32  ;;  %v1248_v20 = vrot.slane %v2300_v5, 1  ;;  %v1123_v24 = vrot.slane %v2290_v3, 2  ;;  %v1125_v27 = vrot.slane %v2285_v57, 1 }
 0x1e3   : > { %v1017_v52 = vadd.f32 %v1638_v8, %v2195_v12  ;;  %v1008_v31 = vpop.f32.mrb[5].mxu1  ;;  %v1199_v16 = vsel %vm1051_vm13, %v1198_v26, %v2211_v39  ;;  %v1107_v47 = vsel %vm1051_vm13, %v1106_v43, %v2214_v40  ;;  %v1265_v58 = vrot.slane %v2300_v5, 2 }
 0x1e4   : > { %v1009_v59 = vadd.f32 %v2195_v12, %v1008_v31  ;;  %v1639_v23 = vpop.f32.mrb[6].mxu1  ;;  %v1201_v35 = vsel %vm1054_vm14, %v1200_v48, %v1199_v16  ;;  %v1108_v7 = vsel %vm1054_vm14, %v2285_v57, %v1107_v47  ;;  %v1249_v41 = vsel %vm1051_vm13, %v1248_v20, %v2223_v46 }
 0x1e5   : > { %v2356_v11 = vmax.f32 %v1017_v52, 0.0  ;;  %v1020_v39 = vadd.f32 %v1639_v23, %v2195_v12  ;;  %v1011_v17 = vpop.f32.mrb[7].mxu1  ;;  %v1203_v40 = vsel %vm1057_vm15, %v1202_v2, %v1201_v35  ;;  %v1110_v38 = vsel %vm1057_vm15, %v1109_v30, %v1108_v7 }
 0x1e6   : > { %v2365_v48 = vmax.f32 %v1009_v59, 0.0  ;;  %v1012_v42 = vadd.f32 %v2195_v12, %v1011_v17  ;;  %v1205_v46 = vsel %vm1060_vm0, %v1204_v29, %v1203_v40  ;;  %v1112_v37 = vsel %vm1060_vm0, %v1111_v33, %v1110_v38 }
 0x1e7   : > { %v2374_v0 = vmax.f32 %v1020_v39, 0.0  ;;  %v1098_v2 = vrot.slane %v2356_v11, 3  ;;  %v1081_v18 = vrot.slane %v2356_v11, 2  ;;  %v1065_v30 = vrot.slane %v2356_v11, 1 }
 0x1e8   : > { %v2379_v32 = vmax.f32 %v1012_v42, 0.0  ;;  %v1096_v12 = vrot.slane %v2365_v48, 4  ;;  %v1079_v26 = vrot.slane %v2365_v48, 3  ;;  %v1062_v29 = vrot.slane %v2365_v48, 2 }
 0x1e9   : > { %v1240_v43 = vrot.slane %v2374_v0, 3  ;;  %v1223_v33 = vrot.slane %v2374_v0, 2  ;;  %v1208_v8 = vrot.slane %v2374_v0, 1  ;;  %v1113_v20 = vrot.slane %v2365_v48, 5 }
 0x1ea   : > { %v1097_v52 = vsel %vm1063_vm1, %v1096_v12, %v1095_v10  ;;  %v1238_v31 = vrot.slane %v2379_v32, 4  ;;  %v1080_v16 = vsel %vm1063_vm1, %v1079_v26, %v1078_v19  ;;  %v1221_v47 = vrot.slane %v2379_v32, 3 }
 0x1eb   : > { %v1099_v59 = vsel %vm1066_vm2, %v1098_v2, %v1097_v52  ;;  %v2394_v23 = vsel %vm1066_vm2, %v1081_v18, %v1080_v16  ;;  %v1064_v35 = vsel %vm1063_vm1, %v1062_v29, %v1061_v22  ;;  %v1206_v7 = vrot.slane %v2379_v32, 2 }
 0x1ec   : > { %1100 = vrot.lane.b32.xlu0 %v1099_v59, %s1775_s5  ;;  %v1239_v39 = vsel %vm1063_vm1, %v1238_v31, %v1237_v13  ;;  %v1222_v10 = vsel %vm1063_vm1, %v1221_v47, %v1220_v28  ;;  %v2402_v17 = vsel %vm1066_vm2, %v1065_v30, %v1064_v35  ;;  %v1114_v19 = vsel %vm1063_vm1, %v1113_v20, %v1112_v37 }
 0x1ed   : > { %v1241_v40 = vsel %vm1066_vm2, %v1240_v43, %v1239_v39  ;;  %v2407_v38 = vsel %vm1066_vm2, %v1223_v33, %v1222_v10  ;;  %v1207_v22 = vsel %vm1063_vm1, %v1206_v7, %v1205_v46  ;;  %v1115_v42 = vrot.slane %v2356_v11, 4 }
 0x1ee   : > { %1242 = vrot.lane.b32.xlu1 %v1241_v40, %s1775_s5  ;;  %v2413_v13 = vsel %vm1066_vm2, %v1208_v8, %v1207_v22  ;;  %v1250_v28 = vsel %vm1054_vm14, %v2295_v50, %v1249_v41  ;;  %v1255_v2 = vrot.slane %v2379_v32, 5  ;;  %v1257_v37 = vrot.slane %v2374_v0, 4 }
 0x1ef   : > { %v2420_v18 = vsel %vm1066_vm2, %v1115_v42, %v1114_v19  ;;  %v1252_v46 = vsel %vm1057_vm15, %v1251_v34, %v1250_v28  ;;  %v1124_v30 = vsel %vm1051_vm13, %v1123_v24, %v2226_v53  ;;  %v1130_v12 = vrot.slane %v2365_v48, 6 }
 0x1f0   : > { %1353 = vrot.lane.b32.xlu0 %v1099_v59, %s1772_s13  ;;  %v1254_v41 = vsel %vm1060_vm0, %v1253_v36, %v1252_v46  ;;  %v1126_v26 = vsel %vm1054_vm14, %v1125_v27, %v1124_v30  ;;  %v1132_v29 = vrot.slane %v2356_v11, 5  ;;  %v1266_v43 = vsel %vm1051_vm13, %v1265_v58, %v2229_v21 }
 0x1f1   : > { %v1256_v34 = vsel %vm1063_vm1, %v1255_v2, %v1254_v41  ;;  %v1127_v53 = vsel %vm1057_vm15, %v2255_v14, %v1126_v26  ;;  %v1267_v24 = vrot.slane %v2295_v50, 1  ;;  %v1272_v33 = vrot.slane %v2379_v32, 6 }
 0x1f2   : > { %1375 = vrot.lane.b32.xlu1 %v1241_v40, %s1772_s13  ;;  %v2443_v36 = vsel %vm1066_vm2, %v1257_v37, %v1256_v34  ;;  %v1129_v27 = vsel %vm1060_vm0, %v1128_v1, %v1127_v53  ;;  %v1274_v21 = vrot.slane %v2374_v0, 5  ;;  %v1140_v58 = vrot.slane %v2290_v3, 3 }
 0x1f3   : > { %v1131_v8 = vsel %vm1063_vm1, %v1130_v12, %v1129_v27  ;;  %v1268_v20 = vsel %vm1054_vm14, %v1267_v24, %v1266_v43  ;;  %v1142_v52 = vrot.slane %v2285_v57, 2  ;;  %v1147_v31 = vrot.slane %v2365_v48, 7 }
 0x1f4   : > { %1083 = vrot.lane.b32.xlu0 %v2394_v23, %s1772_s13  ;;  %v2457_v16 = vsel %vm1066_vm2, %v1132_v29, %v1131_v8  ;;  %v1269_v1 = vsel %vm1057_vm15, %v2259_v61, %v1268_v20  ;;  %v1141_v47 = vsel %vm1051_vm13, %v1140_v58, %v2232_v54  ;;  %v1149_v59 = vrot.slane %v2356_v11, 6 }
 0x1f5   : > { %v1271_v35 = vsel %vm1060_vm0, %v1270_v44, %v1269_v1  ;;  %v1143_v7 = vsel %vm1054_vm14, %v1142_v52, %v1141_v47  ;;  %v1282_v39 = vrot.slane %v2300_v5, 3  ;;  %v1284_v10 = vrot.slane %v2295_v50, 2 }
 0x1f6   : > { %1225 = vrot.lane.b32.xlu1 %v2407_v38, %s1772_s13  ;;  %v1273_v19 = vsel %vm1063_vm1, %v1272_v33, %v1271_v35  ;;  %v1145_v54 = vsel %vm1057_vm15, %v1144_v45, %v1143_v7  ;;  %v1289_v40 = vrot.slane %v2379_v32, 7  ;;  %v1291_v22 = vrot.slane %v2374_v0, 6  ;;  %s1780_s13 = smov 96  }
 0x1f7   : > { %v1275_v44 = vsel %vm1066_vm2, %v1274_v21, %v1273_v19  ;;  %v1146_v42 = vsel %vm1060_vm0, %v2253_v4, %v1145_v54  ;;  %v1283_v28 = vsel %vm1051_vm13, %v1282_v39, %v2235_v60  ;;  %v1157_v2 = vrot.slane %v2290_v3, 4 }
 0x1f8   : > { %1349 = vrot.lane.b32.xlu0 %v2402_v17, %s1776_s9  ;;  %v1148_v45 = vsel %vm1063_vm1, %v1147_v31, %v1146_v42  ;;  %v1285_v37 = vsel %vm1054_vm14, %v1284_v10, %v1283_v28  ;;  %v1159_v46 = vrot.slane %v2285_v57, 3  ;;  %v1166_v30 = vrot.slane %v2356_v11, 7 }
 0x1f9   : > { %v1150_v12 = vsel %vm1066_vm2, %v1149_v59, %v1148_v45  ;;  %v1287_v60 = vsel %vm1057_vm15, %v1286_v51, %v1285_v37  ;;  %v1158_v41 = vsel %vm1051_vm13, %v1157_v2, %v2238_v6  ;;  %v1299_v26 = vrot.slane %v2300_v5, 4 }
 0x1fa   : > { %1371 = vrot.lane.b32.xlu1 %v2413_v13, %s1776_s9  ;;  %v1288_v29 = vsel %vm1060_vm0, %v2257_v15, %v1287_v60  ;;  %v1160_v43 = vsel %vm1054_vm14, %v1159_v46, %v1158_v41  ;;  %v1301_v34 = vrot.slane %v2295_v50, 3  ;;  %v1308_v53 = vrot.slane %v2374_v0, 7 }
 0x1fb   : > { %v1290_v24 = vsel %vm1063_vm1, %v1289_v40, %v1288_v29  ;;  %v1162_v6 = vsel %vm1057_vm15, %v1161_v55, %v1160_v43  ;;  %v1300_v51 = vsel %vm1051_vm13, %v1299_v26, %v2241_v49  ;;  %v1174_v33 = vrot.slane %v2290_v3, 5 }
 0x1fc   : > { %1117 = vrot.lane.b32.xlu0 %v2420_v18, %s1777_s10  ;;  %v1292_v27 = vsel %vm1066_vm2, %v1291_v22, %v1290_v24  ;;  %v1164_v21 = vsel %vm1060_vm0, %v1163_v56, %v1162_v6  ;;  %v1302_v58 = vsel %vm1054_vm14, %v1301_v34, %v1300_v51  ;;  %v1176_v8 = vrot.slane %v2285_v57, 4 }
 0x1fd   : > { %v1165_v55 = vsel %vm1063_vm1, %v2365_v48, %v1164_v21  ;;  %v1304_v49 = vsel %vm1057_vm15, %v1303_v62, %v1302_v58  ;;  %v1175_v3 = vsel %vm1051_vm13, %v1174_v33, %v2244_v9  ;;  %v1182_v20 = vrot.slane %v2365_v48, 1 }
 0x1fe   : > { %1259 = vrot.lane.b32.xlu1 %v2443_v36, %s1777_s10  ;;  %v1167_v56 = vsel %vm1066_vm2, %v1166_v30, %v1165_v55  ;;  %v1306_v57 = vsel %vm1060_vm0, %v1305_v63, %v1304_v49  ;;  %v1177_v52 = vsel %vm1054_vm14, %v1176_v8, %v1175_v3  ;;  %v1316_v31 = vrot.slane %v2300_v5, 5 }
 0x1ff   : > { %v1307_v62 = vsel %vm1063_vm1, %v2379_v32, %v1306_v57  ;;  %v2628_v9 = vrot.slane %v2255_v14, 3  ;;  %v1318_v1 = vrot.slane %v2295_v50, 4  ;;  %v1320_v47 = vrot.slane %v2259_v61, 3 }
 0x200   : > { %1356 = vrot.lane.b32.xlu0 %v2420_v18, %s1775_s5  ;;  %v1309_v63 = vsel %vm1066_vm2, %v1308_v53, %v1307_v62  ;;  %v2629_v59 = vrot.slane %v2253_v4, 2  ;;  %v1317_v35 = vsel %vm1051_vm13, %v1316_v31, %v2247_v25  ;;  %v1324_v14 = vrot.slane %v2379_v32, 1 }
 0x201   : > { %v1179_v48 = vsel %vm1057_vm15, %v2628_v9, %v1177_v52  ;;  %v1319_v50 = vsel %vm1054_vm14, %v1318_v1, %v1317_v35  ;;  %v1322_v61 = vrot.slane %v2257_v15, 2 }
 0x202   : > { %v1181_v5 = vsel %vm1060_vm0, %v2629_v59, %v1179_v48  ;;  %1378 = vrot.lane.b32.xlu1 %v2443_v36, %s1775_s5  ;;  %v1321_v4 = vsel %vm1057_vm15, %v1320_v47, %v1319_v50 }
 0x203   : > { %v1183_v7 = vsel %vm1063_vm1, %v1182_v20, %v1181_v5  ;;  %v1323_v39 = vsel %vm1060_vm0, %v1322_v61, %v1321_v4 }
 0x204   : > { %v1184_v18 = vsel %vm1066_vm2, %v2356_v11, %v1183_v7  ;;  %1134 = vrot.lane.b32.xlu0 %v2457_v16, %s1778_s11  ;;  %v1325_v25 = vsel %vm1063_vm1, %v1324_v14, %v1323_v39 }
 0x205   : > { %v1326_v32 = vsel %vm1066_vm2, %v2374_v0, %v1325_v25 }
 0x206   : > { %1276 = vrot.lane.b32.xlu1 %v1275_v44, %s1778_s11 }
 0x208   : > { %1359 = vrot.lane.b32.xlu0 %v2457_v16, %s1777_s10 }
 0x20a   : > { %1381 = vrot.lane.b32.xlu1 %v1275_v44, %s1777_s10 }
 0x20c   : > { %1151 = vrot.lane.b32.xlu0 %v1150_v12, %s1779_s12 }
 0x20e   : > { %1293 = vrot.lane.b32.xlu1 %v1292_v27, %s1779_s12 }
 0x210   : > { %1362 = vrot.lane.b32.xlu0 %v1150_v12, %s1778_s11 }
 0x212   : > { %1384 = vrot.lane.b32.xlu1 %v1292_v27, %s1778_s11 }
 0x214   : > { %1168 = vrot.lane.b32.xlu0 %v1167_v56, %s1780_s13 }
 0x216   : > { %1310 = vrot.lane.b32.xlu1 %v1309_v63, %s1780_s13 }
 0x218   : > { %1365 = vrot.lane.b32.xlu0 %v1167_v56, %s1779_s12 }
 0x21a   : > { %1387 = vrot.lane.b32.xlu1 %v1309_v63, %s1779_s12 }
 0x21c   : > { %1185 = vrot.lane.b32.xlu0 %v1184_v18, %s1776_s9 }
 0x21e   : > { %1327 = vrot.lane.b32.xlu1 %v1326_v32, %s1776_s9 }
 0x220   : > { %1368 = vrot.lane.b32.xlu0 %v1184_v18, %s1780_s13 }
 0x222   : > { %1390 = vrot.lane.b32.xlu1 %v1326_v32, %s1780_s13 }
 0x25e   : > { %v1101_v15 = vpop.permute.xlu0 %1100 }
 0x260   : > { %v1243_v11 = vpop.permute.xlu1 %1242 }
 0x262   : > { %v1354_v0 = vpop.permute.xlu0 %1353 }
 0x264   : > { %v1376_v36 = vpop.permute.xlu1 %1375 }
 0x266   : > { %v1084_v16 = vpop.permute.xlu0 %1083 }
 0x267   : > { %v1330_v26 = vsel %vm793_vm6, %v2402_v17, %v1084_v16 }
 0x268   : > { %v1226_v10 = vpop.permute.xlu1 %1225  ;;  %v1331_v34 = vsel %vm861_vm10, %v1330_v26, %v1101_v15 }
 0x269   : > { %v1342_v43 = vsel %vm793_vm6, %v2413_v13, %v1226_v10 }
 0x26a   : > { %v1350_v19 = vpop.permute.xlu0 %1349  ;;  %v1343_v17 = vsel %vm861_vm10, %v1342_v43, %v1243_v11 }
 0x26b   : > { %v1393_v24 = vsel %vm793_vm6, %v1350_v19, %v2394_v23 }
 0x26c   : > { %v1372_v54 = vpop.permute.xlu1 %1371  ;;  %v1394_v23 = vsel %vm861_vm10, %v1393_v24, %v1354_v0 }
 0x26d   : > { %v1400_v13 = vsel %vm793_vm6, %v1372_v54, %v2407_v38 }
 0x26e   : > { %v1118_v40 = vpop.permute.xlu0 %1117  ;;  %v1401_v20 = vsel %vm861_vm10, %v1400_v13, %v1376_v36 }
 0x26f   : > { %v1333_v6 = vsel %vm1332_vm3, %v1331_v34, %v1118_v40 }
 0x270   : > { %v1260_v22 = vpop.permute.xlu1 %1259 }
 0x271   : > { %v1344_v27 = vsel %vm1332_vm3, %v1343_v17, %v1260_v22 }
 0x272   : > { %v1357_v44 = vpop.permute.xlu0 %1356 }
 0x273   : > { %v1395_v49 = vsel %vm1332_vm3, %v1394_v23, %v1357_v44 }
 0x274   : > { %v1379_v42 = vpop.permute.xlu1 %1378 }
 0x275   : > { %v1402_v31 = vsel %vm1332_vm3, %v1401_v20, %v1379_v42 }
 0x276   : > { %v1135_v28 = vpop.permute.xlu0 %1134 }
 0x277   : > { %v1335_v51 = vsel %vm1334_vm4, %v1333_v6, %v1135_v28 }
 0x278   : > { %v1277_v2 = vpop.permute.xlu1 %1276 }
 0x279   : > { %v1345_v58 = vsel %vm1334_vm4, %v1344_v27, %v1277_v2 }
 0x27a   : > { %v1360_v45 = vpop.permute.xlu0 %1359 }
 0x27b   : > { %v1396_v56 = vsel %vm1334_vm4, %v1395_v49, %v1360_v45 }
 0x27c   : > { %v1382_v37 = vpop.permute.xlu1 %1381 }
 0x27d   : > { %v1403_v48 = vsel %vm1334_vm4, %v1402_v31, %v1382_v37 }
 0x27e   : > { %v1152_v46 = vpop.permute.xlu0 %1151 }
 0x27f   : > { %v1337_v21 = vsel %vm1336_vm5, %v1335_v51, %v1152_v46 }
 0x280   : > { %v1294_v30 = vpop.permute.xlu1 %1293 }
 0x281   : > { %v1346_v3 = vsel %vm1336_vm5, %v1345_v58, %v1294_v30 }
 0x282   : > { %v1363_v12 = vpop.permute.xlu0 %1362 }
 0x283   : > { %v1397_v62 = vsel %vm1336_vm5, %v1396_v56, %v1363_v12 }
 0x284   : > { %v1385_v60 = vpop.permute.xlu1 %1384 }
 0x285   : > { %v1404_v63 = vsel %vm1336_vm5, %v1403_v48, %v1385_v60 }
 0x286   : > { %v1169_v41 = vpop.permute.xlu0 %1168 }
 0x287   : > { %v1339_v8 = vsel %vm1338_vm7, %v1337_v21, %v1169_v41 }
 0x288   : > { %v1311_v29 = vpop.permute.xlu1 %1310 }
 0x289   : > { %v1347_v57 = vsel %vm1338_vm7, %v1346_v3, %v1311_v29 }
 0x28a   : > { %v1366_v53 = vpop.permute.xlu0 %1365 }
 0x28b   : > { %v1398_v1 = vsel %vm1338_vm7, %v1397_v62, %v1366_v53 }
 0x28c   : > { %v1388_v33 = vpop.permute.xlu1 %1387 }
 0x28d   : > { %v1405_v5 = vsel %vm1338_vm7, %v1404_v63, %v1388_v33 }
 0x28e   : > { %v1186_v55 = vpop.permute.xlu0 %1185 }
 0x28f   : > { %v1341_v38 = vsel %vm1340_vm8, %v1339_v8, %v1186_v55 }
 0x290   : > { %1407 = vst [vmem:[%s350_s25] sm:$0xff] %v1341_v38  ;;  %v1328_v52 = vpop.permute.xlu1 %1327 }
 0x291   : > { %v1348_v9 = vsel %vm1340_vm8, %v1347_v57, %v1328_v52 }
 0x292   : > { %1408 = vst [vmem:[%s350_s25 + $0x8] sm:$0xff] %v1348_v9  ;;  %v1369_v47 = vpop.permute.xlu0 %1368 }
 0x293   : > { %v1399_v59 = vsel %vm1340_vm8, %v1398_v1, %v1369_v47 }
 0x294   : > { %1409 = vst [vmem:[%s350_s25 + $0x10] sm:$0xff] %v1399_v59  ;;  %v1391_v35 = vpop.permute.xlu1 %1390 }
 0x295   : > { %v1406_v14 = vsel %vm1340_vm8, %v1405_v5, %v1391_v35 }
 0x296   : > { %1410 = vst [vmem:[%s350_s25 + $0x18] sm:$0xff] %v1406_v14 }
 0x297 PF: > { %s14_s19 = sadd.s32 1, %s1766_s19   ;;  %s2630_s15 = smov %s1758_s17 }
 0x298   : > { %p11_p9 = scmp.ge.s32.totalorder %s14_s19, 6   ;;  %s2631_s16 = smov %s1762_s18 }
 0x299   : > { %s2632_s17 = smov %s2635_s20  ;;  %s2633_s18 = smov %s2639_s21 }
 0x29a   :  { %13 = sbr.rel (!%p11_p9) target bundleno = 3 (0x3), region = 75 }

</bundles_post_ra>
